<compile_context>
chip_gen: v7x
topology: tpu7x:2x2x1
jax: 0.10.0
libtpu: 0.0.40
codegen_flags: <defaults>
</compile_context>

<pallas_src>
import functools

import jax
import jax.numpy as jnp
from jax.experimental import pallas as pl
from jax.experimental.pallas import tpu as pltpu


def crae_decoder_kernel(x_ref, c_ref,
                        wih0x_ref, wih0c_ref, b0_ref,
                        w_rec_ref, b1_ref,
                        wout_ref, bout_ref,
                        out_ref,
                        *, seq_len, hidden_dim, final_layer):
    H = hidden_dim
    f32 = jnp.float32

    x = x_ref[...]                              # (B, H)
    c = c_ref[...]                              # (B, Cd)
    B = x.shape[0]

    w_rec = w_rec_ref[...]                      # (2H, 8H) fused recurrent weights
    wout = wout_ref[...]                        # (H, F)

    # Time-invariant layer-0 input projection (decoder input is identical at
    # every timestep) -- computed ONCE, both LSTM biases folded in.
    x_proj = (jnp.dot(x, wih0x_ref[...], preferred_element_type=f32)
              + jnp.dot(c, wih0c_ref[...], preferred_element_type=f32)
              + b0_ref[...])                    # (B, 4H)

    # Hoisted constants (JAX does not CSE broadcast_in_dim across the unroll).
    b1_b = jnp.broadcast_to(b1_ref[...], (B, 4 * H))            # (B, 4H)
    lane = jax.lax.broadcasted_iota(jnp.int32, (B, 4 * H), 1)
    g_mask = (lane >= 2 * H) & (lane < 3 * H)                   # tanh-gate lanes

    def lstm_cell(gates, c_state):
        # PyTorch gate order i | f | g | o packed along lanes.
        # Full-vreg sigmoid + tanh + lane-mask blend (no sliced EUP calls).
        act = jnp.where(g_mask, jnp.tanh(gates), jax.nn.sigmoid(gates))
        i = act[:, 0 * H:1 * H]
        f = act[:, 1 * H:2 * H]
        g = act[:, 2 * H:3 * H]
        o = act[:, 3 * H:4 * H]
        c_new = f * c_state + i * g
        h_new = o * jnp.tanh(c_new)
        return h_new, c_new

    c0 = jnp.zeros((B, H), f32)
    c1 = jnp.zeros((B, H), f32)
    h1 = jnp.zeros((B, H), f32)
    gates0 = x_proj                 # h0(t=-1) == 0 -> recurrent term vanishes
    h1_steps = []

    # seq_len is small -> static unroll.
    for t in range(seq_len):
        # ---- layer 0, step t
        h0, c0 = lstm_cell(gates0, c0)

        # ---- one fused recurrent matmul: [h0(t) | h1(t-1)] @ W_rec -> (B, 8H)
        fused = jnp.dot(jnp.concatenate([h0, h1], axis=1), w_rec,
                        preferred_element_type=f32)

        # ---- layer 1, step t: gates are columns 4H:8H (lane-128-aligned slice)
        h1, c1 = lstm_cell(fused[:, 4 * H:8 * H] + b1_b, c1)
        h1_steps.append(h1)

        # ---- layer-0 gates for step t+1: columns 0:4H are h0(t) @ W_hh0^T
        if t + 1 < seq_len:
            gates0 = x_proj + fused[:, 0:4 * H]

    # ---- single batched output projection + bias (+ sigmoid) + single store
    h_all = jnp.concatenate(h1_steps, axis=0)                    # (T*B, H)
    proj = jnp.dot(h_all, wout, preferred_element_type=f32) + bout_ref[...]
    if final_layer:
        proj = jax.nn.sigmoid(proj)
    out_ref[...] = proj.astype(out_ref.dtype)


def crae_decoder_forward(x, c, packed, *, seq_len, hidden_dim, n_features,
                         final_layer=True):
    B, H = x.shape
    Cd = c.shape[1]
    T, F = seq_len, n_features

    args = (x, c,
            packed["wih0x_t"], packed["wih0c_t"], packed["b0"],
            packed["w_rec"], packed["b1"],
            packed["wout_t"], packed["bout"])

    kernel = functools.partial(crae_decoder_kernel, seq_len=T, hidden_dim=H,
                               final_layer=final_layer)

    flops = (2 * B * H * 4 * H + 2 * B * Cd * 4 * H        # input projection (once)
             + T * 2 * B * (2 * H) * (8 * H)               # fused recurrence
             + 2 * T * B * H * F)                          # output projection
    transcendentals = T * 2 * B * 9 * H + T * B * F
    bytes_accessed = (sum(int(a.size) * a.dtype.itemsize for a in args)
                      + T * B * F * 4)

    out2d = pl.pallas_call(
        kernel,
        out_shape=jax.ShapeDtypeStruct((T * B, F), jnp.float32),
        in_specs=[pl.BlockSpec(memory_space=pltpu.MemorySpace.VMEM)] * len(args),
        out_specs=pl.BlockSpec(memory_space=pltpu.MemorySpace.VMEM),
        cost_estimate=pl.CostEstimate(flops=flops,
                                      transcendentals=transcendentals,
                                      bytes_accessed=bytes_accessed),
    )(*args)

    # (T*B, F) t-major rows -> (B, T, F): wrapper-side layout plumbing only.
    return jnp.transpose(out2d.reshape(T, B, F), (1, 0, 2))


def init_params(key, hidden_dim, c_dim, n_features):
    """Deterministic synthetic weights in PyTorch parameter shapes."""
    H, Cd, F = hidden_dim, c_dim, n_features
    k = jax.random.split(key, 10)
    scale = 1.0 / jnp.sqrt(H)

    def u(kk, shape):
        return jax.random.uniform(kk, shape, jnp.float32, -scale, scale)

    return {
        "w_ih0": u(k[0], (4 * H, H + Cd)),
        "w_hh0": u(k[1], (4 * H, H)),
        "b_ih0": u(k[2], (4 * H,)),
        "b_hh0": u(k[3], (4 * H,)),
        "w_ih1": u(k[4], (4 * H, H)),
        "w_hh1": u(k[5], (4 * H, H)),
        "b_ih1": u(k[6], (4 * H,)),
        "b_hh1": u(k[7], (4 * H,)),
        "w_out": u(k[8], (F, H)),
        "b_out": u(k[9], (F,)),
    }


def pack_params(raw, hidden_dim, n_features):
    """Pre-transpose / pre-concatenate weights for the kernel layout (all f32).

    W_rec = [[W_hh0^T, W_ih1^T],
             [   0   , W_hh1^T]]   of shape (2H, 8H):
      [h0 | h1] @ W_rec -> cols 0:4H  = h0 @ W_hh0^T   (next-step layer-0 rec.)
                           cols 4H:8H = h0 @ W_ih1^T + h1 @ W_hh1^T (layer-1)
    """
    H, F = hidden_dim, n_features
    w_rec_top = jnp.concatenate([raw["w_hh0"].T, raw["w_ih1"].T], axis=1)
    w_rec_bot = jnp.concatenate([jnp.zeros((H, 4 * H), jnp.float32),
                                 raw["w_hh1"].T], axis=1)
    return {
        "wih0x_t": raw["w_ih0"][:, :H].T,                          # (H, 4H)
        "wih0c_t": raw["w_ih0"][:, H:].T,                          # (Cd, 4H)
        "b0": (raw["b_ih0"] + raw["b_hh0"]).reshape(1, 4 * H),     # (1, 4H)
        "w_rec": jnp.concatenate([w_rec_top, w_rec_bot], axis=0),  # (2H, 8H)
        "b1": (raw["b_ih1"] + raw["b_hh1"]).reshape(1, 4 * H),     # (1, 4H)
        "wout_t": raw["w_out"].T,                                  # (H, F)
        "bout": raw["b_out"].reshape(1, F),                        # (1, F)
    }


def reference_forward(x, c, raw, *, seq_len, hidden_dim, final_layer=True):
    """Pure-JAX reference mirroring torch.nn.LSTM(num_layers=2) + Linear (+sigmoid)."""
    H = hidden_dim
    B = x.shape[0]
    xc = jnp.concatenate([x, c], axis=1)
    h0 = c0 = h1 = c1 = jnp.zeros((B, H), jnp.float32)

    def cell(g, cs):
        i = jax.nn.sigmoid(g[:, :H])
        f = jax.nn.sigmoid(g[:, H:2 * H])
        gg = jnp.tanh(g[:, 2 * H:3 * H])
        o = jax.nn.sigmoid(g[:, 3 * H:])
        cn = f * cs + i * gg
        return o * jnp.tanh(cn), cn

    outs = []
    for _ in range(seq_len):
        g0 = xc @ raw["w_ih0"].T + raw["b_ih0"] + raw["b_hh0"] + h0 @ raw["w_hh0"].T
        h0, c0 = cell(g0, c0)
        g1 = h0 @ raw["w_ih1"].T + raw["b_ih1"] + raw["b_hh1"] + h1 @ raw["w_hh1"].T
        h1, c1 = cell(g1, c1)
        outs.append(h1 @ raw["w_out"].T + raw["b_out"])
    out = jnp.stack(outs, axis=1)
    if final_layer:
        out = jax.nn.sigmoid(out)
    return out


if __name__ == "__main__":
    batch = 2
    seq_len = 8
    hidden_dim = 32
    c_dim = 8
    n_features = 4

    key = jax.random.PRNGKey(0)
    kx, kc, kp = jax.random.split(key, 3)
    x = jax.random.normal(kx, (batch, hidden_dim), jnp.float32)
    c = jax.random.normal(kc, (batch, c_dim), jnp.float32)
    raw = init_params(kp, hidden_dim, c_dim, n_features)

    packed = pack_params(raw, hidden_dim, n_features)
    out = crae_decoder_forward(x, c, packed, seq_len=seq_len,
                               hidden_dim=hidden_dim, n_features=n_features)
    out = jax.block_until_ready(out)
    assert out.shape == (batch, seq_len, n_features), out.shape

    ref = reference_forward(x, c, raw, seq_len=seq_len, hidden_dim=hidden_dim)
    # Tolerance covers default (non-HIGHEST) MXU matmul precision on both the
    # kernel and the pure-JAX reference; real gate-order/bias bugs are >> 1e-2.
    assert jnp.allclose(out, ref, atol=5e-3, rtol=5e-3), \
        float(jnp.max(jnp.abs(out - ref)))

    print("KERNEL_OK")
</pallas_src>

<mosaic_0001>
module attributes {stable_mosaic.version = 11 : i64} {
  func.func @crae_decoder_kernel(%arg0: memref<2x32xf32, #tpu.memory_space<vmem>>, %arg1: memref<2x8xf32, #tpu.memory_space<vmem>>, %arg2: memref<32x128xf32, #tpu.memory_space<vmem>>, %arg3: memref<8x128xf32, #tpu.memory_space<vmem>>, %arg4: memref<1x128xf32, #tpu.memory_space<vmem>>, %arg5: memref<64x256xf32, #tpu.memory_space<vmem>>, %arg6: memref<1x128xf32, #tpu.memory_space<vmem>>, %arg7: memref<32x4xf32, #tpu.memory_space<vmem>>, %arg8: memref<1x4xf32, #tpu.memory_space<vmem>>, %arg9: memref<16x4xf32, #tpu.memory_space<vmem>>) attributes {dimension_semantics = [], scalar_prefetch = 0 : i64, scratch_operands = 0 : i64, tpu.core_type = #tpu.core_type<tc>} {
    %c0 = arith.constant 0 : index
    %c0_0 = arith.constant 0 : index
    %0 = vector.load %arg0[%c0, %c0_0] : memref<2x32xf32, #tpu.memory_space<vmem>>, vector<2x32xf32>
    %c0_1 = arith.constant 0 : index
    %c0_2 = arith.constant 0 : index
    %1 = vector.load %arg1[%c0_1, %c0_2] : memref<2x8xf32, #tpu.memory_space<vmem>>, vector<2x8xf32>
    %c0_3 = arith.constant 0 : index
    %c0_4 = arith.constant 0 : index
    %2 = vector.load %arg5[%c0_3, %c0_4] : memref<64x256xf32, #tpu.memory_space<vmem>>, vector<64x256xf32>
    %c0_5 = arith.constant 0 : index
    %c0_6 = arith.constant 0 : index
    %3 = vector.load %arg7[%c0_5, %c0_6] : memref<32x4xf32, #tpu.memory_space<vmem>>, vector<32x4xf32>
    %c0_7 = arith.constant 0 : index
    %c0_8 = arith.constant 0 : index
    %4 = vector.load %arg2[%c0_7, %c0_8] : memref<32x128xf32, #tpu.memory_space<vmem>>, vector<32x128xf32>
    %cst = arith.constant dense<0.000000e+00> : vector<2x128xf32>
    %5 = tpu.matmul %0, %4, %cst {dimension_numbers = #tpu.dot_dimension_numbers<[1], [0], [0], [1], [0, 0, 1, 1], [], []>} : vector<2x32xf32>, vector<32x128xf32>, vector<2x128xf32> -> vector<2x128xf32>
    %c0_9 = arith.constant 0 : index
    %c0_10 = arith.constant 0 : index
    %6 = vector.load %arg3[%c0_9, %c0_10] : memref<8x128xf32, #tpu.memory_space<vmem>>, vector<8x128xf32>
    %cst_11 = arith.constant dense<0.000000e+00> : vector<2x128xf32>
    %7 = tpu.matmul %1, %6, %cst_11 {dimension_numbers = #tpu.dot_dimension_numbers<[1], [0], [0], [1], [0, 0, 1, 1], [], []>} : vector<2x8xf32>, vector<8x128xf32>, vector<2x128xf32> -> vector<2x128xf32>
    %8 = arith.addf %5, %7 : vector<2x128xf32>
    %c0_12 = arith.constant 0 : index
    %c0_13 = arith.constant 0 : index
    %9 = vector.load %arg4[%c0_12, %c0_13] : memref<1x128xf32, #tpu.memory_space<vmem>>, vector<1x128xf32>
    %10 = vector.broadcast %9 : vector<1x128xf32> to vector<2x128xf32>
    %11 = arith.addf %8, %10 : vector<2x128xf32>
    %c0_14 = arith.constant 0 : index
    %c0_15 = arith.constant 0 : index
    %12 = vector.load %arg6[%c0_14, %c0_15] : memref<1x128xf32, #tpu.memory_space<vmem>>, vector<1x128xf32>
    %13 = vector.shape_cast %12 : vector<1x128xf32> to vector<1x128xf32>
    %14 = vector.broadcast %13 : vector<1x128xf32> to vector<2x128xf32>
    %15 = tpu.iota {dimensions = array<i32: 1>} : vector<2x128xi32>
    %c64_i32 = arith.constant 64 : i32
    %16 = vector.broadcast %c64_i32 : i32 to vector<2x128xi32>
    %17 = arith.cmpi sge, %15, %16 : vector<2x128xi32>
    %c96_i32 = arith.constant 96 : i32
    %18 = vector.broadcast %c96_i32 : i32 to vector<2x128xi32>
    %19 = arith.cmpi slt, %15, %18 : vector<2x128xi32>
    %20 = arith.andi %17, %19 : vector<2x128xi1>
    %cst_16 = arith.constant 0.000000e+00 : f32
    %21 = vector.broadcast %cst_16 : f32 to vector<2x32xf32>
    %cst_17 = arith.constant 0.000000e+00 : f32
    %22 = vector.broadcast %cst_17 : f32 to vector<2x32xf32>
    %cst_18 = arith.constant 0.000000e+00 : f32
    %23 = vector.broadcast %cst_18 : f32 to vector<2x32xf32>
    %24 = math.tanh %11 : vector<2x128xf32>
    %25 = arith.negf %11 : vector<2x128xf32>
    %26 = math.exp %25 : vector<2x128xf32>
    %cst_19 = arith.constant 1.000000e+00 : f32
    %27 = vector.broadcast %cst_19 : f32 to vector<2x128xf32>
    %28 = arith.addf %27, %26 : vector<2x128xf32>
    %29 = arith.divf %27, %28 : vector<2x128xf32>
    %30 = arith.select %20, %24, %29 : vector<2x128xi1>, vector<2x128xf32>
    %31 = vector.extract_strided_slice %30 {offsets = [0, 0], sizes = [2, 32], strides = [1, 1]} : vector<2x128xf32> to vector<2x32xf32>
    %32 = vector.extract_strided_slice %30 {offsets = [0, 32], sizes = [2, 32], strides = [1, 1]} : vector<2x128xf32> to vector<2x32xf32>
    %33 = vector.extract_strided_slice %30 {offsets = [0, 64], sizes = [2, 32], strides = [1, 1]} : vector<2x128xf32> to vector<2x32xf32>
    %34 = vector.extract_strided_slice %30 {offsets = [0, 96], sizes = [2, 32], strides = [1, 1]} : vector<2x128xf32> to vector<2x32xf32>
    %35 = arith.mulf %32, %21 : vector<2x32xf32>
    %36 = arith.mulf %31, %33 : vector<2x32xf32>
    %37 = arith.addf %35, %36 : vector<2x32xf32>
    %38 = math.tanh %37 : vector<2x32xf32>
    %39 = arith.mulf %34, %38 : vector<2x32xf32>
    %40 = tpu.concatenate %39, %23 in 1 : vector<2x32xf32>, vector<2x32xf32> -> vector<2x64xf32>
    %cst_20 = arith.constant dense<0.000000e+00> : vector<2x256xf32>
    %41 = tpu.matmul %40, %2, %cst_20 {dimension_numbers = #tpu.dot_dimension_numbers<[1], [0], [0], [1], [0, 0, 1, 1], [], []>} : vector<2x64xf32>, vector<64x256xf32>, vector<2x256xf32> -> vector<2x256xf32>
    %42 = vector.extract_strided_slice %41 {offsets = [0, 128], sizes = [2, 128], strides = [1, 1]} : vector<2x256xf32> to vector<2x128xf32>
    %43 = arith.addf %42, %14 : vector<2x128xf32>
    %44 = math.tanh %43 : vector<2x128xf32>
    %45 = arith.negf %43 : vector<2x128xf32>
    %46 = math.exp %45 : vector<2x128xf32>
    %cst_21 = arith.constant 1.000000e+00 : f32
    %47 = vector.broadcast %cst_21 : f32 to vector<2x128xf32>
    %48 = arith.addf %47, %46 : vector<2x128xf32>
    %49 = arith.divf %47, %48 : vector<2x128xf32>
    %50 = arith.select %20, %44, %49 : vector<2x128xi1>, vector<2x128xf32>
    %51 = vector.extract_strided_slice %50 {offsets = [0, 0], sizes = [2, 32], strides = [1, 1]} : vector<2x128xf32> to vector<2x32xf32>
    %52 = vector.extract_strided_slice %50 {offsets = [0, 32], sizes = [2, 32], strides = [1, 1]} : vector<2x128xf32> to vector<2x32xf32>
    %53 = vector.extract_strided_slice %50 {offsets = [0, 64], sizes = [2, 32], strides = [1, 1]} : vector<2x128xf32> to vector<2x32xf32>
    %54 = vector.extract_strided_slice %50 {offsets = [0, 96], sizes = [2, 32], strides = [1, 1]} : vector<2x128xf32> to vector<2x32xf32>
    %55 = arith.mulf %52, %22 : vector<2x32xf32>
    %56 = arith.mulf %51, %53 : vector<2x32xf32>
    %57 = arith.addf %55, %56 : vector<2x32xf32>
    %58 = math.tanh %57 : vector<2x32xf32>
    %59 = arith.mulf %54, %58 : vector<2x32xf32>
    %60 = vector.extract_strided_slice %41 {offsets = [0, 0], sizes = [2, 128], strides = [1, 1]} : vector<2x256xf32> to vector<2x128xf32>
    %61 = arith.addf %11, %60 : vector<2x128xf32>
    %62 = math.tanh %61 : vector<2x128xf32>
    %63 = arith.negf %61 : vector<2x128xf32>
    %64 = math.exp %63 : vector<2x128xf32>
    %cst_22 = arith.constant 1.000000e+00 : f32
    %65 = vector.broadcast %cst_22 : f32 to vector<2x128xf32>
    %66 = arith.addf %65, %64 : vector<2x128xf32>
    %67 = arith.divf %65, %66 : vector<2x128xf32>
    %68 = arith.select %20, %62, %67 : vector<2x128xi1>, vector<2x128xf32>
    %69 = vector.extract_strided_slice %68 {offsets = [0, 0], sizes = [2, 32], strides = [1, 1]} : vector<2x128xf32> to vector<2x32xf32>
    %70 = vector.extract_strided_slice %68 {offsets = [0, 32], sizes = [2, 32], strides = [1, 1]} : vector<2x128xf32> to vector<2x32xf32>
    %71 = vector.extract_strided_slice %68 {offsets = [0, 64], sizes = [2, 32], strides = [1, 1]} : vector<2x128xf32> to vector<2x32xf32>
    %72 = vector.extract_strided_slice %68 {offsets = [0, 96], sizes = [2, 32], strides = [1, 1]} : vector<2x128xf32> to vector<2x32xf32>
    %73 = arith.mulf %70, %37 : vector<2x32xf32>
    %74 = arith.mulf %69, %71 : vector<2x32xf32>
    %75 = arith.addf %73, %74 : vector<2x32xf32>
    %76 = math.tanh %75 : vector<2x32xf32>
    %77 = arith.mulf %72, %76 : vector<2x32xf32>
    %78 = tpu.concatenate %77, %59 in 1 : vector<2x32xf32>, vector<2x32xf32> -> vector<2x64xf32>
    %cst_23 = arith.constant dense<0.000000e+00> : vector<2x256xf32>
    %79 = tpu.matmul %78, %2, %cst_23 {dimension_numbers = #tpu.dot_dimension_numbers<[1], [0], [0], [1], [0, 0, 1, 1], [], []>} : vector<2x64xf32>, vector<64x256xf32>, vector<2x256xf32> -> vector<2x256xf32>
    %80 = vector.extract_strided_slice %79 {offsets = [0, 128], sizes = [2, 128], strides = [1, 1]} : vector<2x256xf32> to vector<2x128xf32>
    %81 = arith.addf %80, %14 : vector<2x128xf32>
    %82 = math.tanh %81 : vector<2x128xf32>
    %83 = arith.negf %81 : vector<2x128xf32>
    %84 = math.exp %83 : vector<2x128xf32>
    %cst_24 = arith.constant 1.000000e+00 : f32
    %85 = vector.broadcast %cst_24 : f32 to vector<2x128xf32>
    %86 = arith.addf %85, %84 : vector<2x128xf32>
    %87 = arith.divf %85, %86 : vector<2x128xf32>
    %88 = arith.select %20, %82, %87 : vector<2x128xi1>, vector<2x128xf32>
    %89 = vector.extract_strided_slice %88 {offsets = [0, 0], sizes = [2, 32], strides = [1, 1]} : vector<2x128xf32> to vector<2x32xf32>
    %90 = vector.extract_strided_slice %88 {offsets = [0, 32], sizes = [2, 32], strides = [1, 1]} : vector<2x128xf32> to vector<2x32xf32>
    %91 = vector.extract_strided_slice %88 {offsets = [0, 64], sizes = [2, 32], strides = [1, 1]} : vector<2x128xf32> to vector<2x32xf32>
    %92 = vector.extract_strided_slice %88 {offsets = [0, 96], sizes = [2, 32], strides = [1, 1]} : vector<2x128xf32> to vector<2x32xf32>
    %93 = arith.mulf %90, %57 : vector<2x32xf32>
    %94 = arith.mulf %89, %91 : vector<2x32xf32>
    %95 = arith.addf %93, %94 : vector<2x32xf32>
    %96 = math.tanh %95 : vector<2x32xf32>
    %97 = arith.mulf %92, %96 : vector<2x32xf32>
    %98 = vector.extract_strided_slice %79 {offsets = [0, 0], sizes = [2, 128], strides = [1, 1]} : vector<2x256xf32> to vector<2x128xf32>
    %99 = arith.addf %11, %98 : vector<2x128xf32>
    %100 = math.tanh %99 : vector<2x128xf32>
    %101 = arith.negf %99 : vector<2x128xf32>
    %102 = math.exp %101 : vector<2x128xf32>
    %cst_25 = arith.constant 1.000000e+00 : f32
    %103 = vector.broadcast %cst_25 : f32 to vector<2x128xf32>
    %104 = arith.addf %103, %102 : vector<2x128xf32>
    %105 = arith.divf %103, %104 : vector<2x128xf32>
    %106 = arith.select %20, %100, %105 : vector<2x128xi1>, vector<2x128xf32>
    %107 = vector.extract_strided_slice %106 {offsets = [0, 0], sizes = [2, 32], strides = [1, 1]} : vector<2x128xf32> to vector<2x32xf32>
    %108 = vector.extract_strided_slice %106 {offsets = [0, 32], sizes = [2, 32], strides = [1, 1]} : vector<2x128xf32> to vector<2x32xf32>
    %109 = vector.extract_strided_slice %106 {offsets = [0, 64], sizes = [2, 32], strides = [1, 1]} : vector<2x128xf32> to vector<2x32xf32>
    %110 = vector.extract_strided_slice %106 {offsets = [0, 96], sizes = [2, 32], strides = [1, 1]} : vector<2x128xf32> to vector<2x32xf32>
    %111 = arith.mulf %108, %75 : vector<2x32xf32>
    %112 = arith.mulf %107, %109 : vector<2x32xf32>
    %113 = arith.addf %111, %112 : vector<2x32xf32>
    %114 = math.tanh %113 : vector<2x32xf32>
    %115 = arith.mulf %110, %114 : vector<2x32xf32>
    %116 = tpu.concatenate %115, %97 in 1 : vector<2x32xf32>, vector<2x32xf32> -> vector<2x64xf32>
    %cst_26 = arith.constant dense<0.000000e+00> : vector<2x256xf32>
    %117 = tpu.matmul %116, %2, %cst_26 {dimension_numbers = #tpu.dot_dimension_numbers<[1], [0], [0], [1], [0, 0, 1, 1], [], []>} : vector<2x64xf32>, vector<64x256xf32>, vector<2x256xf32> -> vector<2x256xf32>
    %118 = vector.extract_strided_slice %117 {offsets = [0, 128], sizes = [2, 128], strides = [1, 1]} : vector<2x256xf32> to vector<2x128xf32>
    %119 = arith.addf %118, %14 : vector<2x128xf32>
    %120 = math.tanh %119 : vector<2x128xf32>
    %121 = arith.negf %119 : vector<2x128xf32>
    %122 = math.exp %121 : vector<2x128xf32>
    %cst_27 = arith.constant 1.000000e+00 : f32
    %123 = vector.broadcast %cst_27 : f32 to vector<2x128xf32>
    %124 = arith.addf %123, %122 : vector<2x128xf32>
    %125 = arith.divf %123, %124 : vector<2x128xf32>
    %126 = arith.select %20, %120, %125 : vector<2x128xi1>, vector<2x128xf32>
    %127 = vector.extract_strided_slice %126 {offsets = [0, 0], sizes = [2, 32], strides = [1, 1]} : vector<2x128xf32> to vector<2x32xf32>
    %128 = vector.extract_strided_slice %126 {offsets = [0, 32], sizes = [2, 32], strides = [1, 1]} : vector<2x128xf32> to vector<2x32xf32>
    %129 = vector.extract_strided_slice %126 {offsets = [0, 64], sizes = [2, 32], strides = [1, 1]} : vector<2x128xf32> to vector<2x32xf32>
    %130 = vector.extract_strided_slice %126 {offsets = [0, 96], sizes = [2, 32], strides = [1, 1]} : vector<2x128xf32> to vector<2x32xf32>
    %131 = arith.mulf %128, %95 : vector<2x32xf32>
    %132 = arith.mulf %127, %129 : vector<2x32xf32>
    %133 = arith.addf %131, %132 : vector<2x32xf32>
    %134 = math.tanh %133 : vector<2x32xf32>
    %135 = arith.mulf %130, %134 : vector<2x32xf32>
    %136 = vector.extract_strided_slice %117 {offsets = [0, 0], sizes = [2, 128], strides = [1, 1]} : vector<2x256xf32> to vector<2x128xf32>
    %137 = arith.addf %11, %136 : vector<2x128xf32>
    %138 = math.tanh %137 : vector<2x128xf32>
    %139 = arith.negf %137 : vector<2x128xf32>
    %140 = math.exp %139 : vector<2x128xf32>
    %cst_28 = arith.constant 1.000000e+00 : f32
    %141 = vector.broadcast %cst_28 : f32 to vector<2x128xf32>
    %142 = arith.addf %141, %140 : vector<2x128xf32>
    %143 = arith.divf %141, %142 : vector<2x128xf32>
    %144 = arith.select %20, %138, %143 : vector<2x128xi1>, vector<2x128xf32>
    %145 = vector.extract_strided_slice %144 {offsets = [0, 0], sizes = [2, 32], strides = [1, 1]} : vector<2x128xf32> to vector<2x32xf32>
    %146 = vector.extract_strided_slice %144 {offsets = [0, 32], sizes = [2, 32], strides = [1, 1]} : vector<2x128xf32> to vector<2x32xf32>
    %147 = vector.extract_strided_slice %144 {offsets = [0, 64], sizes = [2, 32], strides = [1, 1]} : vector<2x128xf32> to vector<2x32xf32>
    %148 = vector.extract_strided_slice %144 {offsets = [0, 96], sizes = [2, 32], strides = [1, 1]} : vector<2x128xf32> to vector<2x32xf32>
    %149 = arith.mulf %146, %113 : vector<2x32xf32>
    %150 = arith.mulf %145, %147 : vector<2x32xf32>
    %151 = arith.addf %149, %150 : vector<2x32xf32>
    %152 = math.tanh %151 : vector<2x32xf32>
    %153 = arith.mulf %148, %152 : vector<2x32xf32>
    %154 = tpu.concatenate %153, %135 in 1 : vector<2x32xf32>, vector<2x32xf32> -> vector<2x64xf32>
    %cst_29 = arith.constant dense<0.000000e+00> : vector<2x256xf32>
    %155 = tpu.matmul %154, %2, %cst_29 {dimension_numbers = #tpu.dot_dimension_numbers<[1], [0], [0], [1], [0, 0, 1, 1], [], []>} : vector<2x64xf32>, vector<64x256xf32>, vector<2x256xf32> -> vector<2x256xf32>
    %156 = vector.extract_strided_slice %155 {offsets = [0, 128], sizes = [2, 128], strides = [1, 1]} : vector<2x256xf32> to vector<2x128xf32>
    %157 = arith.addf %156, %14 : vector<2x128xf32>
    %158 = math.tanh %157 : vector<2x128xf32>
    %159 = arith.negf %157 : vector<2x128xf32>
    %160 = math.exp %159 : vector<2x128xf32>
    %cst_30 = arith.constant 1.000000e+00 : f32
    %161 = vector.broadcast %cst_30 : f32 to vector<2x128xf32>
    %162 = arith.addf %161, %160 : vector<2x128xf32>
    %163 = arith.divf %161, %162 : vector<2x128xf32>
    %164 = arith.select %20, %158, %163 : vector<2x128xi1>, vector<2x128xf32>
    %165 = vector.extract_strided_slice %164 {offsets = [0, 0], sizes = [2, 32], strides = [1, 1]} : vector<2x128xf32> to vector<2x32xf32>
    %166 = vector.extract_strided_slice %164 {offsets = [0, 32], sizes = [2, 32], strides = [1, 1]} : vector<2x128xf32> to vector<2x32xf32>
    %167 = vector.extract_strided_slice %164 {offsets = [0, 64], sizes = [2, 32], strides = [1, 1]} : vector<2x128xf32> to vector<2x32xf32>
    %168 = vector.extract_strided_slice %164 {offsets = [0, 96], sizes = [2, 32], strides = [1, 1]} : vector<2x128xf32> to vector<2x32xf32>
    %169 = arith.mulf %166, %133 : vector<2x32xf32>
    %170 = arith.mulf %165, %167 : vector<2x32xf32>
    %171 = arith.addf %169, %170 : vector<2x32xf32>
    %172 = math.tanh %171 : vector<2x32xf32>
    %173 = arith.mulf %168, %172 : vector<2x32xf32>
    %174 = vector.extract_strided_slice %155 {offsets = [0, 0], sizes = [2, 128], strides = [1, 1]} : vector<2x256xf32> to vector<2x128xf32>
    %175 = arith.addf %11, %174 : vector<2x128xf32>
    %176 = math.tanh %175 : vector<2x128xf32>
    %177 = arith.negf %175 : vector<2x128xf32>
    %178 = math.exp %177 : vector<2x128xf32>
    %cst_31 = arith.constant 1.000000e+00 : f32
    %179 = vector.broadcast %cst_31 : f32 to vector<2x128xf32>
    %180 = arith.addf %179, %178 : vector<2x128xf32>
    %181 = arith.divf %179, %180 : vector<2x128xf32>
    %182 = arith.select %20, %176, %181 : vector<2x128xi1>, vector<2x128xf32>
    %183 = vector.extract_strided_slice %182 {offsets = [0, 0], sizes = [2, 32], strides = [1, 1]} : vector<2x128xf32> to vector<2x32xf32>
    %184 = vector.extract_strided_slice %182 {offsets = [0, 32], sizes = [2, 32], strides = [1, 1]} : vector<2x128xf32> to vector<2x32xf32>
    %185 = vector.extract_strided_slice %182 {offsets = [0, 64], sizes = [2, 32], strides = [1, 1]} : vector<2x128xf32> to vector<2x32xf32>
    %186 = vector.extract_strided_slice %182 {offsets = [0, 96], sizes = [2, 32], strides = [1, 1]} : vector<2x128xf32> to vector<2x32xf32>
    %187 = arith.mulf %184, %151 : vector<2x32xf32>
    %188 = arith.mulf %183, %185 : vector<2x32xf32>
    %189 = arith.addf %187, %188 : vector<2x32xf32>
    %190 = math.tanh %189 : vector<2x32xf32>
    %191 = arith.mulf %186, %190 : vector<2x32xf32>
    %192 = tpu.concatenate %191, %173 in 1 : vector<2x32xf32>, vector<2x32xf32> -> vector<2x64xf32>
    %cst_32 = arith.constant dense<0.000000e+00> : vector<2x256xf32>
    %193 = tpu.matmul %192, %2, %cst_32 {dimension_numbers = #tpu.dot_dimension_numbers<[1], [0], [0], [1], [0, 0, 1, 1], [], []>} : vector<2x64xf32>, vector<64x256xf32>, vector<2x256xf32> -> vector<2x256xf32>
    %194 = vector.extract_strided_slice %193 {offsets = [0, 128], sizes = [2, 128], strides = [1, 1]} : vector<2x256xf32> to vector<2x128xf32>
    %195 = arith.addf %194, %14 : vector<2x128xf32>
    %196 = math.tanh %195 : vector<2x128xf32>
    %197 = arith.negf %195 : vector<2x128xf32>
    %198 = math.exp %197 : vector<2x128xf32>
    %cst_33 = arith.constant 1.000000e+00 : f32
    %199 = vector.broadcast %cst_33 : f32 to vector<2x128xf32>
    %200 = arith.addf %199, %198 : vector<2x128xf32>
    %201 = arith.divf %199, %200 : vector<2x128xf32>
    %202 = arith.select %20, %196, %201 : vector<2x128xi1>, vector<2x128xf32>
    %203 = vector.extract_strided_slice %202 {offsets = [0, 0], sizes = [2, 32], strides = [1, 1]} : vector<2x128xf32> to vector<2x32xf32>
    %204 = vector.extract_strided_slice %202 {offsets = [0, 32], sizes = [2, 32], strides = [1, 1]} : vector<2x128xf32> to vector<2x32xf32>
    %205 = vector.extract_strided_slice %202 {offsets = [0, 64], sizes = [2, 32], strides = [1, 1]} : vector<2x128xf32> to vector<2x32xf32>
    %206 = vector.extract_strided_slice %202 {offsets = [0, 96], sizes = [2, 32], strides = [1, 1]} : vector<2x128xf32> to vector<2x32xf32>
    %207 = arith.mulf %204, %171 : vector<2x32xf32>
    %208 = arith.mulf %203, %205 : vector<2x32xf32>
    %209 = arith.addf %207, %208 : vector<2x32xf32>
    %210 = math.tanh %209 : vector<2x32xf32>
    %211 = arith.mulf %206, %210 : vector<2x32xf32>
    %212 = vector.extract_strided_slice %193 {offsets = [0, 0], sizes = [2, 128], strides = [1, 1]} : vector<2x256xf32> to vector<2x128xf32>
    %213 = arith.addf %11, %212 : vector<2x128xf32>
    %214 = math.tanh %213 : vector<2x128xf32>
    %215 = arith.negf %213 : vector<2x128xf32>
    %216 = math.exp %215 : vector<2x128xf32>
    %cst_34 = arith.constant 1.000000e+00 : f32
    %217 = vector.broadcast %cst_34 : f32 to vector<2x128xf32>
    %218 = arith.addf %217, %216 : vector<2x128xf32>
    %219 = arith.divf %217, %218 : vector<2x128xf32>
    %220 = arith.select %20, %214, %219 : vector<2x128xi1>, vector<2x128xf32>
    %221 = vector.extract_strided_slice %220 {offsets = [0, 0], sizes = [2, 32], strides = [1, 1]} : vector<2x128xf32> to vector<2x32xf32>
    %222 = vector.extract_strided_slice %220 {offsets = [0, 32], sizes = [2, 32], strides = [1, 1]} : vector<2x128xf32> to vector<2x32xf32>
    %223 = vector.extract_strided_slice %220 {offsets = [0, 64], sizes = [2, 32], strides = [1, 1]} : vector<2x128xf32> to vector<2x32xf32>
    %224 = vector.extract_strided_slice %220 {offsets = [0, 96], sizes = [2, 32], strides = [1, 1]} : vector<2x128xf32> to vector<2x32xf32>
    %225 = arith.mulf %222, %189 : vector<2x32xf32>
    %226 = arith.mulf %221, %223 : vector<2x32xf32>
    %227 = arith.addf %225, %226 : vector<2x32xf32>
    %228 = math.tanh %227 : vector<2x32xf32>
    %229 = arith.mulf %224, %228 : vector<2x32xf32>
    %230 = tpu.concatenate %229, %211 in 1 : vector<2x32xf32>, vector<2x32xf32> -> vector<2x64xf32>
    %cst_35 = arith.constant dense<0.000000e+00> : vector<2x256xf32>
    %231 = tpu.matmul %230, %2, %cst_35 {dimension_numbers = #tpu.dot_dimension_numbers<[1], [0], [0], [1], [0, 0, 1, 1], [], []>} : vector<2x64xf32>, vector<64x256xf32>, vector<2x256xf32> -> vector<2x256xf32>
    %232 = vector.extract_strided_slice %231 {offsets = [0, 128], sizes = [2, 128], strides = [1, 1]} : vector<2x256xf32> to vector<2x128xf32>
    %233 = arith.addf %232, %14 : vector<2x128xf32>
    %234 = math.tanh %233 : vector<2x128xf32>
    %235 = arith.negf %233 : vector<2x128xf32>
    %236 = math.exp %235 : vector<2x128xf32>
    %cst_36 = arith.constant 1.000000e+00 : f32
    %237 = vector.broadcast %cst_36 : f32 to vector<2x128xf32>
    %238 = arith.addf %237, %236 : vector<2x128xf32>
    %239 = arith.divf %237, %238 : vector<2x128xf32>
    %240 = arith.select %20, %234, %239 : vector<2x128xi1>, vector<2x128xf32>
    %241 = vector.extract_strided_slice %240 {offsets = [0, 0], sizes = [2, 32], strides = [1, 1]} : vector<2x128xf32> to vector<2x32xf32>
    %242 = vector.extract_strided_slice %240 {offsets = [0, 32], sizes = [2, 32], strides = [1, 1]} : vector<2x128xf32> to vector<2x32xf32>
    %243 = vector.extract_strided_slice %240 {offsets = [0, 64], sizes = [2, 32], strides = [1, 1]} : vector<2x128xf32> to vector<2x32xf32>
    %244 = vector.extract_strided_slice %240 {offsets = [0, 96], sizes = [2, 32], strides = [1, 1]} : vector<2x128xf32> to vector<2x32xf32>
    %245 = arith.mulf %242, %209 : vector<2x32xf32>
    %246 = arith.mulf %241, %243 : vector<2x32xf32>
    %247 = arith.addf %245, %246 : vector<2x32xf32>
    %248 = math.tanh %247 : vector<2x32xf32>
    %249 = arith.mulf %244, %248 : vector<2x32xf32>
    %250 = vector.extract_strided_slice %231 {offsets = [0, 0], sizes = [2, 128], strides = [1, 1]} : vector<2x256xf32> to vector<2x128xf32>
    %251 = arith.addf %11, %250 : vector<2x128xf32>
    %252 = math.tanh %251 : vector<2x128xf32>
    %253 = arith.negf %251 : vector<2x128xf32>
    %254 = math.exp %253 : vector<2x128xf32>
    %cst_37 = arith.constant 1.000000e+00 : f32
    %255 = vector.broadcast %cst_37 : f32 to vector<2x128xf32>
    %256 = arith.addf %255, %254 : vector<2x128xf32>
    %257 = arith.divf %255, %256 : vector<2x128xf32>
    %258 = arith.select %20, %252, %257 : vector<2x128xi1>, vector<2x128xf32>
    %259 = vector.extract_strided_slice %258 {offsets = [0, 0], sizes = [2, 32], strides = [1, 1]} : vector<2x128xf32> to vector<2x32xf32>
    %260 = vector.extract_strided_slice %258 {offsets = [0, 32], sizes = [2, 32], strides = [1, 1]} : vector<2x128xf32> to vector<2x32xf32>
    %261 = vector.extract_strided_slice %258 {offsets = [0, 64], sizes = [2, 32], strides = [1, 1]} : vector<2x128xf32> to vector<2x32xf32>
    %262 = vector.extract_strided_slice %258 {offsets = [0, 96], sizes = [2, 32], strides = [1, 1]} : vector<2x128xf32> to vector<2x32xf32>
    %263 = arith.mulf %260, %227 : vector<2x32xf32>
    %264 = arith.mulf %259, %261 : vector<2x32xf32>
    %265 = arith.addf %263, %264 : vector<2x32xf32>
    %266 = math.tanh %265 : vector<2x32xf32>
    %267 = arith.mulf %262, %266 : vector<2x32xf32>
    %268 = tpu.concatenate %267, %249 in 1 : vector<2x32xf32>, vector<2x32xf32> -> vector<2x64xf32>
    %cst_38 = arith.constant dense<0.000000e+00> : vector<2x256xf32>
    %269 = tpu.matmul %268, %2, %cst_38 {dimension_numbers = #tpu.dot_dimension_numbers<[1], [0], [0], [1], [0, 0, 1, 1], [], []>} : vector<2x64xf32>, vector<64x256xf32>, vector<2x256xf32> -> vector<2x256xf32>
    %270 = vector.extract_strided_slice %269 {offsets = [0, 128], sizes = [2, 128], strides = [1, 1]} : vector<2x256xf32> to vector<2x128xf32>
    %271 = arith.addf %270, %14 : vector<2x128xf32>
    %272 = math.tanh %271 : vector<2x128xf32>
    %273 = arith.negf %271 : vector<2x128xf32>
    %274 = math.exp %273 : vector<2x128xf32>
    %cst_39 = arith.constant 1.000000e+00 : f32
    %275 = vector.broadcast %cst_39 : f32 to vector<2x128xf32>
    %276 = arith.addf %275, %274 : vector<2x128xf32>
    %277 = arith.divf %275, %276 : vector<2x128xf32>
    %278 = arith.select %20, %272, %277 : vector<2x128xi1>, vector<2x128xf32>
    %279 = vector.extract_strided_slice %278 {offsets = [0, 0], sizes = [2, 32], strides = [1, 1]} : vector<2x128xf32> to vector<2x32xf32>
    %280 = vector.extract_strided_slice %278 {offsets = [0, 32], sizes = [2, 32], strides = [1, 1]} : vector<2x128xf32> to vector<2x32xf32>
    %281 = vector.extract_strided_slice %278 {offsets = [0, 64], sizes = [2, 32], strides = [1, 1]} : vector<2x128xf32> to vector<2x32xf32>
    %282 = vector.extract_strided_slice %278 {offsets = [0, 96], sizes = [2, 32], strides = [1, 1]} : vector<2x128xf32> to vector<2x32xf32>
    %283 = arith.mulf %280, %247 : vector<2x32xf32>
    %284 = arith.mulf %279, %281 : vector<2x32xf32>
    %285 = arith.addf %283, %284 : vector<2x32xf32>
    %286 = math.tanh %285 : vector<2x32xf32>
    %287 = arith.mulf %282, %286 : vector<2x32xf32>
    %288 = vector.extract_strided_slice %269 {offsets = [0, 0], sizes = [2, 128], strides = [1, 1]} : vector<2x256xf32> to vector<2x128xf32>
    %289 = arith.addf %11, %288 : vector<2x128xf32>
    %290 = math.tanh %289 : vector<2x128xf32>
    %291 = arith.negf %289 : vector<2x128xf32>
    %292 = math.exp %291 : vector<2x128xf32>
    %cst_40 = arith.constant 1.000000e+00 : f32
    %293 = vector.broadcast %cst_40 : f32 to vector<2x128xf32>
    %294 = arith.addf %293, %292 : vector<2x128xf32>
    %295 = arith.divf %293, %294 : vector<2x128xf32>
    %296 = arith.select %20, %290, %295 : vector<2x128xi1>, vector<2x128xf32>
    %297 = vector.extract_strided_slice %296 {offsets = [0, 0], sizes = [2, 32], strides = [1, 1]} : vector<2x128xf32> to vector<2x32xf32>
    %298 = vector.extract_strided_slice %296 {offsets = [0, 32], sizes = [2, 32], strides = [1, 1]} : vector<2x128xf32> to vector<2x32xf32>
    %299 = vector.extract_strided_slice %296 {offsets = [0, 64], sizes = [2, 32], strides = [1, 1]} : vector<2x128xf32> to vector<2x32xf32>
    %300 = vector.extract_strided_slice %296 {offsets = [0, 96], sizes = [2, 32], strides = [1, 1]} : vector<2x128xf32> to vector<2x32xf32>
    %301 = arith.mulf %298, %265 : vector<2x32xf32>
    %302 = arith.mulf %297, %299 : vector<2x32xf32>
    %303 = arith.addf %301, %302 : vector<2x32xf32>
    %304 = math.tanh %303 : vector<2x32xf32>
    %305 = arith.mulf %300, %304 : vector<2x32xf32>
    %306 = tpu.concatenate %305, %287 in 1 : vector<2x32xf32>, vector<2x32xf32> -> vector<2x64xf32>
    %cst_41 = arith.constant dense<0.000000e+00> : vector<2x256xf32>
    %307 = tpu.matmul %306, %2, %cst_41 {dimension_numbers = #tpu.dot_dimension_numbers<[1], [0], [0], [1], [0, 0, 1, 1], [], []>} : vector<2x64xf32>, vector<64x256xf32>, vector<2x256xf32> -> vector<2x256xf32>
    %308 = vector.extract_strided_slice %307 {offsets = [0, 128], sizes = [2, 128], strides = [1, 1]} : vector<2x256xf32> to vector<2x128xf32>
    %309 = arith.addf %308, %14 : vector<2x128xf32>
    %310 = math.tanh %309 : vector<2x128xf32>
    %311 = arith.negf %309 : vector<2x128xf32>
    %312 = math.exp %311 : vector<2x128xf32>
    %cst_42 = arith.constant 1.000000e+00 : f32
    %313 = vector.broadcast %cst_42 : f32 to vector<2x128xf32>
    %314 = arith.addf %313, %312 : vector<2x128xf32>
    %315 = arith.divf %313, %314 : vector<2x128xf32>
    %316 = arith.select %20, %310, %315 : vector<2x128xi1>, vector<2x128xf32>
    %317 = vector.extract_strided_slice %316 {offsets = [0, 0], sizes = [2, 32], strides = [1, 1]} : vector<2x128xf32> to vector<2x32xf32>
    %318 = vector.extract_strided_slice %316 {offsets = [0, 32], sizes = [2, 32], strides = [1, 1]} : vector<2x128xf32> to vector<2x32xf32>
    %319 = vector.extract_strided_slice %316 {offsets = [0, 64], sizes = [2, 32], strides = [1, 1]} : vector<2x128xf32> to vector<2x32xf32>
    %320 = vector.extract_strided_slice %316 {offsets = [0, 96], sizes = [2, 32], strides = [1, 1]} : vector<2x128xf32> to vector<2x32xf32>
    %321 = arith.mulf %318, %285 : vector<2x32xf32>
    %322 = arith.mulf %317, %319 : vector<2x32xf32>
    %323 = arith.addf %321, %322 : vector<2x32xf32>
    %324 = math.tanh %323 : vector<2x32xf32>
    %325 = arith.mulf %320, %324 : vector<2x32xf32>
    %326 = tpu.concatenate %59, %97, %135, %173, %211, %249, %287, %325 in 0 : vector<2x32xf32>, vector<2x32xf32>, vector<2x32xf32>, vector<2x32xf32>, vector<2x32xf32>, vector<2x32xf32>, vector<2x32xf32>, vector<2x32xf32> -> vector<16x32xf32>
    %cst_43 = arith.constant dense<0.000000e+00> : vector<16x4xf32>
    %327 = tpu.matmul %326, %3, %cst_43 {dimension_numbers = #tpu.dot_dimension_numbers<[1], [0], [0], [1], [0, 0, 1, 1], [], []>} : vector<16x32xf32>, vector<32x4xf32>, vector<16x4xf32> -> vector<16x4xf32>
    %c0_44 = arith.constant 0 : index
    %c0_45 = arith.constant 0 : index
    %328 = vector.load %arg8[%c0_44, %c0_45] : memref<1x4xf32, #tpu.memory_space<vmem>>, vector<1x4xf32>
    %329 = vector.broadcast %328 : vector<1x4xf32> to vector<16x4xf32>
    %330 = arith.addf %327, %329 : vector<16x4xf32>
    %331 = arith.negf %330 : vector<16x4xf32>
    %332 = math.exp %331 : vector<16x4xf32>
    %cst_46 = arith.constant 1.000000e+00 : f32
    %333 = vector.broadcast %cst_46 : f32 to vector<16x4xf32>
    %334 = arith.addf %333, %332 : vector<16x4xf32>
    %335 = arith.divf %333, %334 : vector<16x4xf32>
    %c0_47 = arith.constant 0 : index
    %c0_48 = arith.constant 0 : index
    %336 = vector.load %arg9[%c0_47, %c0_48] : memref<16x4xf32, #tpu.memory_space<vmem>>, vector<16x4xf32>
    tpu.vector_store %arg9[%c0_47, %c0_48], %335 {strides = array<i32>} : memref<16x4xf32, #tpu.memory_space<vmem>>, vector<16x4xf32>,
    return
  }
}

</mosaic_0001>

<bundles_post_ra>
// kernel: tpu_custom_call.1
= control target key start
LH: loop header
LB: loop body
LE: loop exit
PB: predicated region body
PF: predicated region fallthrough
CT: control target
= control target key end

     0   :  { %14 = vsyncpa [#allocation3], 0  ;;  %s2274_s0 = inlined_call_operand.vmem [shape: f32[2,32], index: 0, kind: input, shape index: {}]   ;;  %s2275_s1 = inlined_call_operand.hbm [shape: f32[2,8], index: 1, kind: input, shape index: {}]   ;;  %s2276_s2 = inlined_call_operand.vmem [shape: f32[32,128], index: 2, kind: input, shape index: {}]   ;;  %s2277_s3 = inlined_call_operand.vmem [shape: f32[8,128], index: 3, kind: input, shape index: {}]   ;;  %s2278_s4 = inlined_call_operand.vmem [shape: f32[1,128], index: 4, kind: input, shape index: {}]   ;;  %s2279_s5 = inlined_call_operand.hbm [shape: f32[64,256], index: 5, kind: input, shape index: {}]   ;;  %s2280_s6 = inlined_call_operand.vmem [shape: f32[1,128], index: 6, kind: input, shape index: {}]   ;;  %s2281_s7 = inlined_call_operand.vmem [shape: f32[32,4], index: 7, kind: input, shape index: {}]   ;;  %s2282_s8 = inlined_call_operand.vmem [shape: f32[1,4], index: 8, kind: input, shape index: {}]   ;;  %s2283_s9 = inlined_call_operand.vmem [shape: f32[16,4], index: 9, kind: output, shape index: {}]  }
   0x1   :  { %15 = vsyncpa [#allocation5], 0  ;;  %s1871_s30 = smov [#allocation2]   ;;  %s1872_s11 = smov [#allocation4]  }
   0x2   :  { %s24_s10 = sshll.u32 %s1871_s30, 4  ;;  %s39_s12 = sshll.u32 %s1872_s11, 4  ;;  %s25_s10 = int_to_ptr.vmem [resolvable:$true] %s24_s10  ;;  %s1930_s12 = int_to_ptr.vmem [resolvable:$true] %s39_s12 }
   0x3   :  { %s1823_s15 = scalar_lea.hbm %s2275_s1, 32 }
   0x4   :  { %p1824_p0 = scmp.ne.s32.totalorder %s2275_s1, %s1823_s15  ;;  %p1827_p1 = scmp.lt.u32.totalorder %s1823_s15, %s2275_s1 }
   0x6   :  { %p1829_p2 = pnand %p1827_p1, %p1824_p0 }
   0x8   :  { %1832 = shalt.err (!%p1829_p2)
}
   0x9   :  { %s1833_s20 = scalar_lea.vmem %s25_s10, 32  ;;  %p1838_p4 = scmp.lt.s32.totalorder %s25_s10, %s25_s10 }
   0xa   :  { %p1834_p3 = scmp.ne.s32.totalorder %s25_s10, %s1833_s20  ;;  %p1839_p5 = scmp.lt.s32.totalorder %s1833_s20, %s1833_s20 }
   0xc   :  { %p1840_p6 = por %p1839_p5, %p1838_p4 }
   0xe   :  { %p1841_p7 = pnand %p1840_p6, %p1834_p3 }
  0x10   :  { %1844 = shalt.err (!%p1841_p7)
}
  0x11   :  { %27 = dma.hbm_to_vmem [thread:$0]  %s2275_s1, 32, %s25_s10, [#allocation3]  }
  0x12   :  { %s1845_s25 = scalar_lea.hbm %s2279_s5, 2048 }
  0x13   :  { %p1846_p8 = scmp.ne.s32.totalorder %s2279_s5, %s1845_s25  ;;  %p1849_p9 = scmp.lt.u32.totalorder %s1845_s25, %s2279_s5 }
  0x15   :  { %p1851_p10 = pnand %p1849_p9, %p1846_p8 }
  0x17   :  { %1854 = shalt.err (!%p1851_p10)
}
  0x18   :  { %s1855_s30 = scalar_lea.vmem %s1930_s12, 2048  ;;  %p1860_p12 = scmp.lt.s32.totalorder %s1930_s12, %s1930_s12 }
  0x19   :  { %p1856_p11 = scmp.ne.s32.totalorder %s1930_s12, %s1855_s30  ;;  %p1861_p13 = scmp.lt.s32.totalorder %s1855_s30, %s1855_s30 }
  0x1b   :  { %p1862_p0 = por %p1861_p13, %p1860_p12 }
  0x1d   :  { %p1863_p1 = pnand %p1862_p0, %p1856_p11 }
  0x1f   :  { %1866 = shalt.err (!%p1863_p1)
}
  0x20   :  { %s1873_s1 = smov 256   ;;  %s1874_s10 = smov 16  }
  0x21   :  { %45 = dma.hbm_to_vmem [thread:$0]  %s2279_s5, 2048, %s1930_s12, [#allocation5], %s1873_s1, %s1873_s1, %s1874_s10  }
  0x22   :  { %1867 = dma.done.wait [#allocation3], 32  }
  0x23   :  { %1868 = vsyncadd [#allocation3], 4294967264 }
  0x24   :  { %1869 = dma.done.wait [#allocation5], 2048  }
  0x25   :  { %1870 = vsyncadd [#allocation5], 4294965248  ;;  %v1875_v0 = vmov 0.0|0.0   ;;  %v1876_v1 = vmov 0.0   ;;  %vm1877_vm0 = vmmov 0   ;;  %v80_v2 = vld [vmem:[%s2276_s2] sm:$0xff]  ;;  %v248_v20 = vlaneseq }
  0x26   :  { %1536 = vmatprep.subr.bf16.mxu1 %v1875_v0  ;;  %1509 = vmatprep.subr.mxu0 %v1876_v1  ;;  %v81_v3 = vld [vmem:[%s2276_s2 + $0x8] sm:$0xff]  ;;  %v82_v4 = vld [vmem:[%s2276_s2 + $0x10] sm:$0xff]  ;;  %vm85_vm1 = vcmask 64512   ;;  %v83_v6 = vld [vmem:[%s2276_s2 + $0x18] sm:$0xff]  ;;  %vm159_vm2 = vcmask 261120   ;;  %vm283_vm6 = vcmask 523264  }
  0x27   :  { %1511 = vmatprep.mubr.msk.f32.mxu0 %vm1877_vm0, %v1876_v1  ;;  %1522 = vmatprep.mubr.msk.f32.mxu1 %vm1877_vm0, %v1876_v1  ;;  %v1537_v5 = vpack.c.bf16 %v81_v3, %v80_v2  ;;  %v84_v7 = vld [vmem:[%s2277_s3] sm:$0xff]  ;;  %v1540_v9 = vpack.c.bf16 %v83_v6, %v82_v4  ;;  %v249_v22 = vand.u32 127, %v248_v20  ;;  %v61_v32 = vld [vmem:[#allocation4 + $0x8] sm:$0xff]  ;;  %v62_v36 = vld [vmem:[#allocation4 + $0x10] sm:$0xff]  ;;  %vm1341_vm7 = vcmask 1041408  }
  0x28   :  { %v59_v8 = vld [vmem:[#allocation2] sm:$0x3]  ;;  %1510 = vmatpush3.msra.mxu0 %v84_v7  ;;  %v60_v34 = vld [vmem:[#allocation4] sm:$0xff]  ;;  %v65_v37 = vld [vmem:[#allocation4 + $0x28] sm:$0xff]  ;;  %vm1343_vm8 = vcmask 1043456   ;;  %vm1345_vm9 = vcmask 1045504  }
  0x29   :  { %1538 = vmatpush3.bf16.msra.mxu1 %v1537_v5  ;;  %1512 = vmatmul.mubr.msk.f32.vlgmr.msra.gmra.mrb[0].mxu0 %vm85_vm1, %v59_v8  ;;  %v58_v10 = vld [vmem:[%s2274_s0] sm:$0x3]  ;;  %vm250_vm3 = vcmp.ge.s32.totalorder %v249_v22, 64  ;;  %vm251_vm4 = vcmp.lt.s32.totalorder %v249_v22, 96  ;;  %s1878_s0 = smov 64   ;;  %v2005_v39 = vpack.c.bf16 %v62_v36, %v60_v34  ;;  %v64_v41 = vld [vmem:[#allocation4 + $0x20] sm:$0xff] }
  0x2a   :  { %1539 = vmatprep.subr.bf16.mxu1 %v1875_v0  ;;  %351 = vmatprep.mubr.f32.mxu0 %v1876_v1  ;;  %v1465_v14 = vld [vmem:[%s2278_s4] ss:$0 sm:$0xff]  ;;  %vm1992_vm5 = vmand %vm250_vm3, %vm251_vm4  ;;  %s1879_s4 = smov 32   ;;  %v66_v42 = vld [vmem:[#allocation4 + $0x30] sm:$0xff]  ;;  %vm1454_vm10 = vcmask 31744  }
  0x2b   :  { %v63_v33 = vld [vmem:[#allocation4 + $0x18] sm:$0xff]  ;;  %v69_v43 = vld [vmem:[#allocation4 + $0x48] sm:$0xff]  ;;  %v2012_v45 = vpack.c.bf16 %v66_v42, %v64_v41  ;;  %v68_v47 = vld [vmem:[#allocation4 + $0x40] sm:$0xff] }
  0x2c   :  { %v2003_v35 = vpack.c.bf16 %v63_v33, %v61_v32  ;;  %v67_v38 = vld [vmem:[#allocation4 + $0x38] sm:$0xff]  ;;  %v70_v48 = vld [vmem:[#allocation4 + $0x50] sm:$0xff]  ;;  %v73_v49 = vld [vmem:[#allocation4 + $0x68] sm:$0xff] }
  0x2d   :  { %1541 = vmatpush3.bf16.msra.mxu1 %v1540_v9  ;;  %v2007_v40 = vpack.c.bf16 %v67_v38, %v65_v37  ;;  %v71_v44 = vld [vmem:[#allocation4 + $0x58] sm:$0xff]  ;;  %v2020_v51 = vpack.c.bf16 %v70_v48, %v68_v47  ;;  %v72_v53 = vld [vmem:[#allocation4 + $0x60] sm:$0xff]  ;;  %v74_v54 = vld [vmem:[#allocation4 + $0x70] sm:$0xff] }
  0x2e   :  { %1543 = vmatprep.subr.bf16.mxu0 %v2003_v35  ;;  %1559 = vmatprep.subr.bf16.mxu1 %v2003_v35  ;;  %v2016_v46 = vpack.c.bf16 %v71_v44, %v69_v43  ;;  %v75_v50 = vld [vmem:[#allocation4 + $0x78] sm:$0xff]  ;;  %v2029_v56 = vpack.c.bf16 %v74_v54, %v72_v53 }
  0x2f   :  { %1545 = vmatpush1.bf16.msra.mxu0 %v2005_v39  ;;  %v2024_v52 = vpack.c.bf16 %v75_v50, %v73_v49  ;;  %v2053_v61 = vld [vmem:[%s2280_s6] ss:$0 sm:$0xff] }
  0x30   :  { %1523 = vmatmul.mubr.msk.f32.vlgmr.msra.gmra.mrb[0].mxu1 %vm159_vm2, %v58_v10  ;;  %1547 = vmatprep.subr.bf16.mxu0 %v2007_v40  ;;  %v76_v23 = vld [vmem:[%s2281_s7] sm:$0xff] }
  0x31   :  { %486 = vmatprep.mubr.f32.mxu1 %v1876_v1  ;;  %1561 = vmatpush1.bf16.msra.mxu1 %v2005_v39 }
  0x32   :  { %1563 = vmatprep.subr.bf16.mxu1 %v2007_v40 }
  0x33   :  { %1549 = vmatpush1.bf16.msra.mxu0 %v2012_v45 }
  0x34   :  { %1551 = vmatprep.subr.bf16.mxu0 %v2016_v46 }
  0x35   :  { %1565 = vmatpush1.bf16.msra.mxu1 %v2012_v45 }
  0x36   :  { %1567 = vmatprep.subr.bf16.mxu1 %v2016_v46 }
  0x37   :  { %1553 = vmatpush1.bf16.msra.mxu0 %v2020_v51 }
  0x38   :  { %1555 = vmatprep.subr.bf16.mxu0 %v2024_v52 }
  0x39   :  { %1569 = vmatpush1.bf16.msra.mxu1 %v2020_v51 }
  0x3a   :  { %1571 = vmatprep.subr.bf16.mxu1 %v2024_v52 }
  0x3b   :  { %1557 = vmatpush1.bf16.msra.mxu0 %v2029_v56 }
  0x3c   :  { %1575 = vmatprep.subr.bf16.mxu0 %v2003_v35 }
  0x3d   :  { %1573 = vmatpush1.bf16.msra.mxu1 %v2029_v56 }
  0x3e   :  { %1591 = vmatprep.subr.bf16.mxu1 %v2003_v35 }
  0xfc   :  { %v155_v11 = vpop.f32.mrb[0].mxu0 }
  0xfd   :  { %v1513_v12 = vpop.f32.mrb[1].mxu0 }
 0x103   :  { %v229_v13 = vpop.f32.mrb[0].mxu1 }
 0x104   :  { %v230_v15 = vadd.f32 %v229_v13, %v155_v11  ;;  %v1524_v16 = vpop.f32.mrb[1].mxu1 }
 0x106   :  { %v1988_v17 = vadd.f32 %v1465_v14, %v230_v15 }
 0x108   :  { %v1467_v18 = vmul.f32 -1.442695, %v1988_v17 }
 0x10a   :  { %1687 = vpow2.f32 %v1467_v18 }
 0x10b   :  { %1689 = vtanh.f32 %v1988_v17 }
 0x114   :  { %v1688_v19 = vpop.eup %1687 }
 0x115   :  { %v257_v21 = vadd.f32 1.0, %v1688_v19  ;;  %v1690_v24 = vpop.eup %1689 }
 0x117   :  { %1691 = vrcp.f32 %v257_v21 }
 0x121   :  { %v1692_v25 = vpop.eup %1691 }
 0x122   :  { %v260_v26 = vsel %vm1992_vm5, %v1690_v24, %v1692_v25 }
 0x123   :  { %263 = vrot.lane.b32.xlu0 %v260_v26, %s1878_s0  ;;  %v261_v29 = vmul.f32 0.0, %v260_v26 }
 0x195   :  { %v264_v27 = vpop.permute.xlu0 %263 }
 0x196   :  { %v266_v28 = vmul.f32 %v264_v27, %v260_v26 }
 0x198   :  { %268 = vrot.lane.b32.xlu0 %v266_v28, %s1879_s4 }
 0x20a   :  { %v269_v30 = vpop.permute.xlu0 %268 }
 0x20b   :  { %v2000_v31 = vadd.f32 %v269_v30, %v261_v29 }
 0x20d   :  { %1693 = vtanh.f32 %v2000_v31 }
 0x217   :  { %v1694_v55 = vpop.eup %1693 }
 0x218   :  { %274 = vrot.lane.b32.xlu1 %v1694_v55, %s1878_s0 }
 0x28a   :  { %v275_v57 = vpop.permute.xlu1 %274 }
 0x28b   :  { %v277_v58 = vmul.f32 %v275_v57, %v260_v26 }
 0x28d   :  { %279 = vrot.lane.b32.xlu1 %v277_v58, %s1879_s4 }
 0x2ff   :  { %v280_v59 = vpop.permute.xlu1 %279 }
 0x300   :  { %v282_v60 = vsel %vm159_vm2, %v280_v59, 0.0 }
 0x301   :  { %1468 = vmatmul.mubr.msk.f32.vlgmr.msra.gmra.mrb[2].mxu0 %vm283_vm6, %v282_v60 }
 0x302   :  { %1577 = vmatpush1.bf16.msra.mxu0 %v2005_v39  ;;  %621 = vmatprep.mubr.f32.mxu0 %v1876_v1 }
 0x303   :  { %1579 = vmatprep.subr.bf16.mxu0 %v2007_v40 }
 0x306   :  { %1581 = vmatpush1.bf16.msra.mxu0 %v2012_v45 }
 0x307   :  { %1583 = vmatprep.subr.bf16.mxu0 %v2016_v46 }
 0x30a   :  { %1585 = vmatpush1.bf16.msra.mxu0 %v2020_v51 }
 0x30b   :  { %1587 = vmatprep.subr.bf16.mxu0 %v2024_v52 }
 0x30e   :  { %1589 = vmatpush1.bf16.msra.mxu0 %v2029_v56 }
 0x30f   :  { %1607 = vmatprep.subr.bf16.mxu0 %v2003_v35 }
 0x3d4   :  { %v353_v62 = vpop.f32.mrb[2].mxu0 }
 0x3d5   :  { %v384_v63 = vadd.f32 %v353_v62, %v1988_v17  ;;  %v355_v0 = vpop.f32.mrb[3].mxu0 }
 0x3d6   :  { %v358_v2 = vadd.f32 %v2053_v61, %v355_v0 }
 0x3d7   :  { %v1470_v3 = vmul.f32 -1.442695, %v384_v63 }
 0x3d8   :  { %v1469_v4 = vmul.f32 -1.442695, %v358_v2 }
 0x3d9   :  { %1695 = vpow2.f32 %v1470_v3 }
 0x3da   :  { %1697 = vpow2.f32 %v1469_v4 }
 0x3db   :  { %1699 = vtanh.f32 %v384_v63 }
 0x3dc   :  { %1701 = vtanh.f32 %v358_v2 }
 0x3e3   :  { %v1696_v5 = vpop.eup %1695 }
 0x3e4   :  { %v1698_v6 = vpop.eup %1697  ;;  %v389_v7 = vadd.f32 1.0, %v1696_v5 }
 0x3e5   :  { %v363_v8 = vadd.f32 1.0, %v1698_v6  ;;  %v1700_v9 = vpop.eup %1699 }
 0x3e6   :  { %1703 = vrcp.f32 %v389_v7  ;;  %v1702_v10 = vpop.eup %1701 }
 0x3e7   :  { %1705 = vrcp.f32 %v363_v8 }
 0x3f0   :  { %v1704_v11 = vpop.eup %1703 }
 0x3f1   :  { %v1706_v12 = vpop.eup %1705  ;;  %v392_v13 = vsel %vm1992_vm5, %v1700_v9, %v1704_v11 }
 0x3f2   :  { %395 = vrot.lane.b32.xlu1 %v392_v13, %s1878_s0  ;;  %v366_v14 = vsel %vm1992_vm5, %v1702_v10, %v1706_v12  ;;  %v393_v20 = vmul.f32 %v392_v13, %v2000_v31 }
 0x3f3   :  { %369 = vrot.lane.b32.xlu0 %v366_v14, %s1878_s0  ;;  %v367_v22 = vmul.f32 0.0, %v366_v14 }
 0x464   :  { %v396_v15 = vpop.permute.xlu1 %395 }
 0x465   :  { %v398_v16 = vmul.f32 %v396_v15, %v392_v13  ;;  %v370_v18 = vpop.permute.xlu0 %369 }
 0x466   :  { %v372_v19 = vmul.f32 %v370_v18, %v366_v14 }
 0x467   :  { %400 = vrot.lane.b32.xlu1 %v398_v16, %s1879_s4 }
 0x468   :  { %374 = vrot.lane.b32.xlu0 %v372_v19, %s1879_s4 }
 0x4d9   :  { %v401_v21 = vpop.permute.xlu1 %400 }
 0x4da   :  { %v403_v24 = vadd.f32 %v401_v21, %v393_v20  ;;  %v375_v25 = vpop.permute.xlu0 %374 }
 0x4db   :  { %v377_v26 = vadd.f32 %v375_v25, %v367_v22 }
 0x4dc   :  { %1707 = vtanh.f32 %v403_v24 }
 0x4dd   :  { %1709 = vtanh.f32 %v377_v26 }
 0x4e6   :  { %v1708_v27 = vpop.eup %1707 }
 0x4e7   :  { %v1710_v28 = vpop.eup %1709  ;;  %406 = vrot.lane.b32.xlu1 %v1708_v27, %s1878_s0 }
 0x4e8   :  { %380 = vrot.lane.b32.xlu0 %v1710_v28, %s1878_s0 }
 0x559   :  { %v407_v29 = vpop.permute.xlu1 %406 }
 0x55a   :  { %v409_v30 = vmul.f32 %v407_v29, %v392_v13  ;;  %v381_v32 = vpop.permute.xlu0 %380 }
 0x55b   :  { %v2068_v33 = vmul.f32 %v381_v32, %v366_v14 }
 0x55c   :  { %411 = vrot.lane.b32.xlu0 %v409_v30, %s1879_s4 }
 0x55d   :  { %415 = vrot.lane.b32.xlu1 %v2068_v33, %s1878_s0 }
 0x5ce   :  { %v412_v31 = vpop.permute.xlu0 %411 }
 0x5cf   :  { %v416_v34 = vpop.permute.xlu1 %415 }
 0x5d0   :  { %v418_v36 = vsel %vm159_vm2, %v412_v31, %v416_v34 }
 0x5d1   :  { %1471 = vmatmul.mubr.msk.f32.vlgmr.msra.gmra.mrb[2].mxu1 %vm283_vm6, %v418_v36 }
 0x5d2   :  { %1593 = vmatpush1.bf16.msra.mxu1 %v2005_v39  ;;  %756 = vmatprep.mubr.f32.mxu1 %v1876_v1 }
 0x5d3   :  { %1595 = vmatprep.subr.bf16.mxu1 %v2007_v40 }
 0x5d6   :  { %1597 = vmatpush1.bf16.msra.mxu1 %v2012_v45 }
 0x5d7   :  { %1599 = vmatprep.subr.bf16.mxu1 %v2016_v46 }
 0x5da   :  { %1601 = vmatpush1.bf16.msra.mxu1 %v2020_v51 }
 0x5db   :  { %1603 = vmatprep.subr.bf16.mxu1 %v2024_v52 }
 0x5de   :  { %1605 = vmatpush1.bf16.msra.mxu1 %v2029_v56 }
 0x5df   :  { %1623 = vmatprep.subr.bf16.mxu1 %v2003_v35 }
 0x6a4   :  { %v488_v37 = vpop.f32.mrb[2].mxu1 }
 0x6a5   :  { %v519_v38 = vadd.f32 %v488_v37, %v1988_v17  ;;  %v490_v41 = vpop.f32.mrb[3].mxu1 }
 0x6a6   :  { %v493_v42 = vadd.f32 %v2053_v61, %v490_v41 }
 0x6a7   :  { %v1473_v43 = vmul.f32 -1.442695, %v519_v38 }
 0x6a8   :  { %v1472_v44 = vmul.f32 -1.442695, %v493_v42 }
 0x6a9   :  { %1711 = vpow2.f32 %v1473_v43 }
 0x6aa   :  { %1713 = vpow2.f32 %v1472_v44 }
 0x6ab   :  { %1715 = vtanh.f32 %v519_v38 }
 0x6ac   :  { %1717 = vtanh.f32 %v493_v42 }
 0x6b3   :  { %v1712_v47 = vpop.eup %1711 }
 0x6b4   :  { %v1714_v48 = vpop.eup %1713  ;;  %v524_v49 = vadd.f32 1.0, %v1712_v47 }
 0x6b5   :  { %v498_v50 = vadd.f32 1.0, %v1714_v48  ;;  %v1716_v53 = vpop.eup %1715 }
 0x6b6   :  { %1719 = vrcp.f32 %v524_v49  ;;  %v1718_v54 = vpop.eup %1717 }
 0x6b7   :  { %1721 = vrcp.f32 %v498_v50 }
 0x6c0   :  { %v1720_v55 = vpop.eup %1719 }
 0x6c1   :  { %v1722_v57 = vpop.eup %1721  ;;  %v527_v58 = vsel %vm1992_vm5, %v1716_v53, %v1720_v55 }
 0x6c2   :  { %530 = vrot.lane.b32.xlu1 %v527_v58, %s1878_s0  ;;  %v501_v59 = vsel %vm1992_vm5, %v1718_v54, %v1722_v57  ;;  %v528_v2 = vmul.f32 %v527_v58, %v403_v24 }
 0x6c3   :  { %504 = vrot.lane.b32.xlu0 %v501_v59, %s1878_s0  ;;  %v502_v4 = vmul.f32 %v501_v59, %v377_v26 }
 0x734   :  { %v531_v60 = vpop.permute.xlu1 %530 }
 0x735   :  { %v533_v62 = vmul.f32 %v531_v60, %v527_v58  ;;  %v505_v63 = vpop.permute.xlu0 %504 }
 0x736   :  { %v507_v0 = vmul.f32 %v505_v63, %v501_v59 }
 0x737   :  { %535 = vrot.lane.b32.xlu1 %v533_v62, %s1879_s4 }
 0x738   :  { %509 = vrot.lane.b32.xlu0 %v507_v0, %s1879_s4 }
 0x7a9   :  { %v536_v3 = vpop.permute.xlu1 %535 }
 0x7aa   :  { %v538_v5 = vadd.f32 %v536_v3, %v528_v2  ;;  %v510_v6 = vpop.permute.xlu0 %509 }
 0x7ab   :  { %v512_v7 = vadd.f32 %v510_v6, %v502_v4 }
 0x7ac   :  { %1723 = vtanh.f32 %v538_v5 }
 0x7ad   :  { %1725 = vtanh.f32 %v512_v7 }
 0x7b6   :  { %v1724_v8 = vpop.eup %1723 }
 0x7b7   :  { %v1726_v9 = vpop.eup %1725  ;;  %541 = vrot.lane.b32.xlu1 %v1724_v8, %s1878_s0 }
 0x7b8   :  { %515 = vrot.lane.b32.xlu0 %v1726_v9, %s1878_s0 }
 0x829   :  { %v542_v10 = vpop.permute.xlu1 %541 }
 0x82a   :  { %v544_v11 = vmul.f32 %v542_v10, %v527_v58  ;;  %v516_v12 = vpop.permute.xlu0 %515 }
 0x82b   :  { %v2096_v13 = vmul.f32 %v516_v12, %v501_v59 }
 0x82c   :  { %546 = vrot.lane.b32.xlu0 %v544_v11, %s1879_s4 }
 0x82d   :  { %550 = vrot.lane.b32.xlu1 %v2096_v13, %s1878_s0  ;;  %v1328_v57 = vrot.slane %v2096_v13, 6 }
 0x82f   :  { %v1342_v63 = vsel %vm1341_vm7, %v2068_v33, %v1328_v57 }
 0x89e   :  { %v547_v14 = vpop.permute.xlu0 %546 }
 0x89f   :  { %v551_v15 = vpop.permute.xlu1 %550 }
 0x8a0   :  { %v553_v16 = vsel %vm159_vm2, %v547_v14, %v551_v15 }
 0x8a1   :  { %1474 = vmatmul.mubr.msk.f32.vlgmr.msra.gmra.mrb[4].mxu0 %vm283_vm6, %v553_v16 }
 0x8a2   :  { %1609 = vmatpush1.bf16.msra.mxu0 %v2005_v39  ;;  %891 = vmatprep.mubr.f32.mxu0 %v1876_v1 }
 0x8a3   :  { %1611 = vmatprep.subr.bf16.mxu0 %v2007_v40 }
 0x8a6   :  { %1613 = vmatpush1.bf16.msra.mxu0 %v2012_v45 }
 0x8a7   :  { %1615 = vmatprep.subr.bf16.mxu0 %v2016_v46 }
 0x8aa   :  { %1617 = vmatpush1.bf16.msra.mxu0 %v2020_v51 }
 0x8ab   :  { %1619 = vmatprep.subr.bf16.mxu0 %v2024_v52 }
 0x8ae   :  { %1621 = vmatpush1.bf16.msra.mxu0 %v2029_v56 }
 0x8af   :  { %1639 = vmatprep.subr.bf16.mxu0 %v2003_v35 }
 0x974   :  { %v623_v18 = vpop.f32.mrb[4].mxu0 }
 0x975   :  { %v654_v19 = vadd.f32 %v623_v18, %v1988_v17  ;;  %v625_v20 = vpop.f32.mrb[5].mxu0 }
 0x976   :  { %v628_v21 = vadd.f32 %v2053_v61, %v625_v20 }
 0x977   :  { %v1476_v22 = vmul.f32 -1.442695, %v654_v19 }
 0x978   :  { %v1475_v24 = vmul.f32 -1.442695, %v628_v21 }
 0x979   :  { %1727 = vpow2.f32 %v1476_v22 }
 0x97a   :  { %1729 = vpow2.f32 %v1475_v24 }
 0x97b   :  { %1731 = vtanh.f32 %v654_v19 }
 0x97c   :  { %1733 = vtanh.f32 %v628_v21 }
 0x983   :  { %v1728_v25 = vpop.eup %1727 }
 0x984   :  { %v1730_v26 = vpop.eup %1729  ;;  %v659_v27 = vadd.f32 1.0, %v1728_v25 }
 0x985   :  { %v633_v28 = vadd.f32 1.0, %v1730_v26  ;;  %v1732_v29 = vpop.eup %1731 }
 0x986   :  { %1735 = vrcp.f32 %v659_v27  ;;  %v1734_v30 = vpop.eup %1733 }
 0x987   :  { %1737 = vrcp.f32 %v633_v28 }
 0x990   :  { %v1736_v32 = vpop.eup %1735 }
 0x991   :  { %v1738_v31 = vpop.eup %1737  ;;  %v662_v34 = vsel %vm1992_vm5, %v1732_v29, %v1736_v32 }
 0x992   :  { %665 = vrot.lane.b32.xlu1 %v662_v34, %s1878_s0  ;;  %v636_v36 = vsel %vm1992_vm5, %v1734_v30, %v1738_v31  ;;  %v663_v43 = vmul.f32 %v662_v34, %v538_v5 }
 0x993   :  { %639 = vrot.lane.b32.xlu0 %v636_v36, %s1878_s0  ;;  %v637_v47 = vmul.f32 %v636_v36, %v512_v7 }
 0xa04   :  { %v666_v37 = vpop.permute.xlu1 %665 }
 0xa05   :  { %v668_v38 = vmul.f32 %v666_v37, %v662_v34  ;;  %v640_v41 = vpop.permute.xlu0 %639 }
 0xa06   :  { %v642_v42 = vmul.f32 %v640_v41, %v636_v36 }
 0xa07   :  { %670 = vrot.lane.b32.xlu1 %v668_v38, %s1879_s4 }
 0xa08   :  { %644 = vrot.lane.b32.xlu0 %v642_v42, %s1879_s4 }
 0xa79   :  { %v671_v44 = vpop.permute.xlu1 %670 }
 0xa7a   :  { %v2122_v48 = vadd.f32 %v671_v44, %v663_v43  ;;  %v645_v49 = vpop.permute.xlu0 %644 }
 0xa7b   :  { %v2124_v50 = vadd.f32 %v645_v49, %v637_v47 }
 0xa7c   :  { %1739 = vtanh.f32 %v2122_v48 }
 0xa7d   :  { %1741 = vtanh.f32 %v2124_v50 }
 0xa86   :  { %v1740_v53 = vpop.eup %1739 }
 0xa87   :  { %v1742_v54 = vpop.eup %1741  ;;  %676 = vrot.lane.b32.xlu1 %v1740_v53, %s1878_s0 }
 0xa88   :  { %650 = vrot.lane.b32.xlu0 %v1742_v54, %s1878_s0 }
 0xaf9   :  { %v677_v55 = vpop.permute.xlu1 %676 }
 0xafa   :  { %v679_v58 = vmul.f32 %v677_v55, %v662_v34  ;;  %v651_v59 = vpop.permute.xlu0 %650 }
 0xafb   :  { %v653_v60 = vmul.f32 %v651_v59, %v636_v36 }
 0xafc   :  { %681 = vrot.lane.b32.xlu0 %v679_v58, %s1879_s4 }
 0xafd   :  { %v1330_v62 = vrot.slane %v653_v60, 4  ;;  %685 = vrot.lane.b32.xlu1 %v653_v60, %s1878_s0 }
 0xaff   :  { %v2136_v0 = vsel %vm1343_vm8, %v1342_v63, %v1330_v62 }
 0xb6e   :  { %v682_v2 = vpop.permute.xlu0 %681 }
 0xb6f   :  { %v686_v3 = vpop.permute.xlu1 %685 }
 0xb70   :  { %v688_v4 = vsel %vm159_vm2, %v682_v2, %v686_v3 }
 0xb71   :  { %1477 = vmatmul.mubr.msk.f32.vlgmr.msra.gmra.mrb[4].mxu1 %vm283_vm6, %v688_v4 }
 0xb72   :  { %1625 = vmatpush1.bf16.msra.mxu1 %v2005_v39  ;;  %1026 = vmatprep.mubr.f32.mxu1 %v1876_v1 }
 0xb73   :  { %1627 = vmatprep.subr.bf16.mxu1 %v2007_v40 }
 0xb76   :  { %1629 = vmatpush1.bf16.msra.mxu1 %v2012_v45 }
 0xb77   :  { %1631 = vmatprep.subr.bf16.mxu1 %v2016_v46 }
 0xb7a   :  { %1633 = vmatpush1.bf16.msra.mxu1 %v2020_v51 }
 0xb7b   :  { %1635 = vmatprep.subr.bf16.mxu1 %v2024_v52 }
 0xb7e   :  { %1637 = vmatpush1.bf16.msra.mxu1 %v2029_v56 }
 0xb7f   :  { %1655 = vmatprep.subr.bf16.mxu1 %v2003_v35 }
 0xc44   :  { %v758_v33 = vpop.f32.mrb[4].mxu1 }
 0xc45   :  { %v789_v5 = vadd.f32 %v758_v33, %v1988_v17  ;;  %v760_v6 = vpop.f32.mrb[5].mxu1 }
 0xc46   :  { %v763_v7 = vadd.f32 %v2053_v61, %v760_v6 }
 0xc47   :  { %v1479_v8 = vmul.f32 -1.442695, %v789_v5 }
 0xc48   :  { %v1478_v9 = vmul.f32 -1.442695, %v763_v7 }
 0xc49   :  { %1743 = vpow2.f32 %v1479_v8 }
 0xc4a   :  { %1745 = vpow2.f32 %v1478_v9 }
 0xc4b   :  { %1747 = vtanh.f32 %v789_v5 }
 0xc4c   :  { %1749 = vtanh.f32 %v763_v7 }
 0xc53   :  { %v1744_v10 = vpop.eup %1743 }
 0xc54   :  { %v1746_v11 = vpop.eup %1745  ;;  %v794_v12 = vadd.f32 1.0, %v1744_v10 }
 0xc55   :  { %v768_v13 = vadd.f32 1.0, %v1746_v11  ;;  %v1748_v14 = vpop.eup %1747 }
 0xc56   :  { %1751 = vrcp.f32 %v794_v12  ;;  %v1750_v35 = vpop.eup %1749 }
 0xc57   :  { %1753 = vrcp.f32 %v768_v13 }
 0xc60   :  { %v1752_v15 = vpop.eup %1751 }
 0xc61   :  { %v1754_v16 = vpop.eup %1753  ;;  %v797_v18 = vsel %vm1992_vm5, %v1748_v14, %v1752_v15 }
 0xc62   :  { %800 = vrot.lane.b32.xlu1 %v797_v18, %s1878_s0  ;;  %v771_v19 = vsel %vm1992_vm5, %v1750_v35, %v1754_v16  ;;  %v798_v25 = vmul.f32 %v797_v18, %v2122_v48 }
 0xc63   :  { %774 = vrot.lane.b32.xlu0 %v771_v19, %s1878_s0  ;;  %v772_v27 = vmul.f32 %v771_v19, %v2124_v50 }
 0xcd4   :  { %v801_v20 = vpop.permute.xlu1 %800 }
 0xcd5   :  { %v803_v21 = vmul.f32 %v801_v20, %v797_v18  ;;  %v775_v22 = vpop.permute.xlu0 %774 }
 0xcd6   :  { %v777_v24 = vmul.f32 %v775_v22, %v771_v19 }
 0xcd7   :  { %805 = vrot.lane.b32.xlu1 %v803_v21, %s1879_s4 }
 0xcd8   :  { %779 = vrot.lane.b32.xlu0 %v777_v24, %s1879_s4 }
 0xd49   :  { %v806_v26 = vpop.permute.xlu1 %805 }
 0xd4a   :  { %v808_v28 = vadd.f32 %v806_v26, %v798_v25  ;;  %v780_v29 = vpop.permute.xlu0 %779 }
 0xd4b   :  { %v782_v30 = vadd.f32 %v780_v29, %v772_v27 }
 0xd4c   :  { %1755 = vtanh.f32 %v808_v28 }
 0xd4d   :  { %1757 = vtanh.f32 %v782_v30 }
 0xd56   :  { %v1756_v32 = vpop.eup %1755 }
 0xd57   :  { %v1758_v31 = vpop.eup %1757  ;;  %811 = vrot.lane.b32.xlu1 %v1756_v32, %s1878_s0 }
 0xd58   :  { %785 = vrot.lane.b32.xlu0 %v1758_v31, %s1878_s0 }
 0xdc9   :  { %v812_v34 = vpop.permute.xlu1 %811 }
 0xdca   :  { %v814_v36 = vmul.f32 %v812_v34, %v797_v18  ;;  %v786_v37 = vpop.permute.xlu0 %785 }
 0xdcb   :  { %v788_v38 = vmul.f32 %v786_v37, %v771_v19 }
 0xdcc   :  { %816 = vrot.lane.b32.xlu0 %v814_v36, %s1879_s4 }
 0xdcd   :  { %v1332_v41 = vrot.slane %v788_v38, 2  ;;  %820 = vrot.lane.b32.xlu1 %v788_v38, %s1878_s0 }
 0xdcf   :  { %v2167_v42 = vsel %vm1345_vm9, %v2136_v0, %v1332_v41 }
 0xe3e   :  { %v817_v43 = vpop.permute.xlu0 %816 }
 0xe3f   :  { %v821_v44 = vpop.permute.xlu1 %820 }
 0xe40   :  { %v823_v47 = vsel %vm159_vm2, %v817_v43, %v821_v44 }
 0xe41   :  { %1480 = vmatmul.mubr.msk.f32.vlgmr.msra.gmra.mrb[6].mxu0 %vm283_vm6, %v823_v47 }
 0xe42   :  { %1641 = vmatpush1.bf16.msra.mxu0 %v2005_v39  ;;  %1161 = vmatprep.mubr.f32.mxu0 %v1876_v1 }
 0xe43   :  { %1643 = vmatprep.subr.bf16.mxu0 %v2007_v40 }
 0xe46   :  { %1645 = vmatpush1.bf16.msra.mxu0 %v2012_v45 }
 0xe47   :  { %1647 = vmatprep.subr.bf16.mxu0 %v2016_v46 }
 0xe4a   :  { %1649 = vmatpush1.bf16.msra.mxu0 %v2020_v51 }
 0xe4b   :  { %1651 = vmatprep.subr.bf16.mxu0 %v2024_v52 }
 0xe4e   :  { %1653 = vmatpush1.bf16.msra.mxu0 %v2029_v56 }
 0xf14   :  { %v893_v48 = vpop.f32.mrb[6].mxu0 }
 0xf15   :  { %v924_v49 = vadd.f32 %v893_v48, %v1988_v17  ;;  %v895_v50 = vpop.f32.mrb[7].mxu0 }
 0xf16   :  { %v898_v53 = vadd.f32 %v2053_v61, %v895_v50 }
 0xf17   :  { %v1482_v54 = vmul.f32 -1.442695, %v924_v49 }
 0xf18   :  { %v1481_v55 = vmul.f32 -1.442695, %v898_v53 }
 0xf19   :  { %1759 = vpow2.f32 %v1482_v54 }
 0xf1a   :  { %1761 = vpow2.f32 %v1481_v55 }
 0xf1b   :  { %1763 = vtanh.f32 %v924_v49 }
 0xf1c   :  { %1765 = vtanh.f32 %v898_v53 }
 0xf23   :  { %v1760_v57 = vpop.eup %1759 }
 0xf24   :  { %v1762_v58 = vpop.eup %1761  ;;  %v929_v59 = vadd.f32 1.0, %v1760_v57 }
 0xf25   :  { %v903_v60 = vadd.f32 1.0, %v1762_v58  ;;  %v1764_v62 = vpop.eup %1763 }
 0xf26   :  { %1767 = vrcp.f32 %v929_v59  ;;  %v1766_v63 = vpop.eup %1765 }
 0xf27   :  { %1769 = vrcp.f32 %v903_v60 }
 0xf30   :  { %v1768_v0 = vpop.eup %1767 }
 0xf31   :  { %v1770_v2 = vpop.eup %1769  ;;  %v932_v3 = vsel %vm1992_vm5, %v1764_v62, %v1768_v0 }
 0xf32   :  { %935 = vrot.lane.b32.xlu1 %v932_v3, %s1878_s0  ;;  %v906_v4 = vsel %vm1992_vm5, %v1766_v63, %v1770_v2  ;;  %v933_v8 = vmul.f32 %v932_v3, %v808_v28 }
 0xf33   :  { %909 = vrot.lane.b32.xlu0 %v906_v4, %s1878_s0  ;;  %v907_v10 = vmul.f32 %v906_v4, %v782_v30 }
 0xfa4   :  { %v936_v33 = vpop.permute.xlu1 %935 }
 0xfa5   :  { %v938_v5 = vmul.f32 %v936_v33, %v932_v3  ;;  %v910_v6 = vpop.permute.xlu0 %909 }
 0xfa6   :  { %v912_v7 = vmul.f32 %v910_v6, %v906_v4 }
 0xfa7   :  { %940 = vrot.lane.b32.xlu1 %v938_v5, %s1879_s4 }
 0xfa8   :  { %914 = vrot.lane.b32.xlu0 %v912_v7, %s1879_s4 }
0x1019   :  { %v941_v9 = vpop.permute.xlu1 %940 }
0x101a   :  { %v943_v11 = vadd.f32 %v941_v9, %v933_v8  ;;  %v915_v12 = vpop.permute.xlu0 %914 }
0x101b   :  { %v917_v13 = vadd.f32 %v915_v12, %v907_v10 }
0x101c   :  { %1771 = vtanh.f32 %v943_v11 }
0x101d   :  { %1773 = vtanh.f32 %v917_v13 }
0x1026   :  { %v1772_v14 = vpop.eup %1771 }
0x1027   :  { %v1774_v35 = vpop.eup %1773  ;;  %946 = vrot.lane.b32.xlu1 %v1772_v14, %s1878_s0 }
0x1028   :  { %920 = vrot.lane.b32.xlu0 %v1774_v35, %s1878_s0 }
0x1099   :  { %v947_v15 = vpop.permute.xlu1 %946 }
0x109a   :  { %v949_v16 = vmul.f32 %v947_v15, %v932_v3  ;;  %v921_v18 = vpop.permute.xlu0 %920 }
0x109b   :  { %v2191_v19 = vmul.f32 %v921_v18, %v906_v4 }
0x109c   :  { %951 = vrot.lane.b32.xlu0 %v949_v16, %s1879_s4 }
0x109d   :  { %955 = vrot.lane.b32.xlu1 %v2191_v19, %s1878_s0 }
0x110e   :  { %v952_v20 = vpop.permute.xlu0 %951 }
0x110f   :  { %v956_v21 = vpop.permute.xlu1 %955 }
0x1110   :  { %v958_v22 = vsel %vm159_vm2, %v952_v20, %v956_v21 }
0x1111   :  { %1483 = vmatmul.mubr.msk.f32.vlgmr.msra.gmra.mrb[6].mxu1 %vm283_vm6, %v958_v22 }
0x1112   :  { %1657 = vmatpush1.bf16.msra.mxu1 %v2005_v39  ;;  %1296 = vmatprep.mubr.f32.mxu1 %v1876_v1 }
0x1113   :  { %1659 = vmatprep.subr.bf16.mxu1 %v2007_v40 }
0x1116   :  { %1661 = vmatpush1.bf16.msra.mxu1 %v2012_v45 }
0x1117   :  { %1663 = vmatprep.subr.bf16.mxu1 %v2016_v46 }
0x111a   :  { %1665 = vmatpush1.bf16.msra.mxu1 %v2020_v51 }
0x111b   :  { %1667 = vmatprep.subr.bf16.mxu1 %v2024_v52 }
0x111e   :  { %1669 = vmatpush1.bf16.msra.mxu1 %v2029_v56 }
0x11e4   :  { %v1028_v24 = vpop.f32.mrb[6].mxu1 }
0x11e5   :  { %v1059_v25 = vadd.f32 %v1028_v24, %v1988_v17  ;;  %v1030_v26 = vpop.f32.mrb[7].mxu1 }
0x11e6   :  { %v1033_v39 = vadd.f32 %v2053_v61, %v1030_v26 }
0x11e7   :  { %v1485_v27 = vmul.f32 -1.442695, %v1059_v25 }
0x11e8   :  { %v1484_v1 = vmul.f32 -1.442695, %v1033_v39 }
0x11e9   :  { %1775 = vpow2.f32 %v1485_v27 }
0x11ea   :  { %1777 = vpow2.f32 %v1484_v1 }
0x11eb   :  { %1779 = vtanh.f32 %v1059_v25 }
0x11ec   :  { %1781 = vtanh.f32 %v1033_v39 }
0x11f3   :  { %v1776_v40 = vpop.eup %1775 }
0x11f4   :  { %v1778_v45 = vpop.eup %1777  ;;  %v1064_v46 = vadd.f32 1.0, %v1776_v40 }
0x11f5   :  { %v1038_v51 = vadd.f32 1.0, %v1778_v45  ;;  %v1780_v52 = vpop.eup %1779 }
0x11f6   :  { %1783 = vrcp.f32 %v1064_v46  ;;  %v1782_v56 = vpop.eup %1781 }
0x11f7   :  { %1785 = vrcp.f32 %v1038_v51 }
0x1200   :  { %v1784_v28 = vpop.eup %1783 }
0x1201   :  { %v1786_v29 = vpop.eup %1785  ;;  %v1067_v30 = vsel %vm1992_vm5, %v1780_v52, %v1784_v28 }
0x1202   :  { %1070 = vrot.lane.b32.xlu1 %v1067_v30, %s1878_s0  ;;  %v1041_v32 = vsel %vm1992_vm5, %v1782_v56, %v1786_v29  ;;  %v1068_v38 = vmul.f32 %v1067_v30, %v943_v11 }
0x1203   :  { %1044 = vrot.lane.b32.xlu0 %v1041_v32, %s1878_s0  ;;  %v1042_v43 = vmul.f32 %v1041_v32, %v917_v13 }
0x1274   :  { %v1071_v31 = vpop.permute.xlu1 %1070 }
0x1275   :  { %v1073_v34 = vmul.f32 %v1071_v31, %v1067_v30  ;;  %v1045_v36 = vpop.permute.xlu0 %1044 }
0x1276   :  { %v1047_v37 = vmul.f32 %v1045_v36, %v1041_v32 }
0x1277   :  { %1075 = vrot.lane.b32.xlu1 %v1073_v34, %s1879_s4 }
0x1278   :  { %1049 = vrot.lane.b32.xlu0 %v1047_v37, %s1879_s4 }
0x12e9   :  { %v1076_v41 = vpop.permute.xlu1 %1075 }
0x12ea   :  { %v1078_v44 = vadd.f32 %v1076_v41, %v1068_v38  ;;  %v1050_v47 = vpop.permute.xlu0 %1049 }
0x12eb   :  { %v1052_v48 = vadd.f32 %v1050_v47, %v1042_v43 }
0x12ec   :  { %1787 = vtanh.f32 %v1078_v44 }
0x12ed   :  { %1789 = vtanh.f32 %v1052_v48 }
0x12f6   :  { %v1788_v49 = vpop.eup %1787 }
0x12f7   :  { %v1790_v50 = vpop.eup %1789  ;;  %1081 = vrot.lane.b32.xlu1 %v1788_v49, %s1878_s0 }
0x12f8   :  { %1055 = vrot.lane.b32.xlu0 %v1790_v50, %s1878_s0  ;;  %v77_v50 = vld [vmem:[%s2281_s7 + $0x8] sm:$0xff] }
0x1369   :  { %v1082_v53 = vpop.permute.xlu1 %1081 }
0x136a   :  { %v1084_v54 = vmul.f32 %v1082_v53, %v1067_v30  ;;  %v1056_v55 = vpop.permute.xlu0 %1055  ;;  %v78_v53 = vld [vmem:[%s2281_s7 + $0x10] sm:$0xff] }
0x136b   :  { %v1058_v57 = vmul.f32 %v1056_v55, %v1041_v32 }
0x136c   :  { %1086 = vrot.lane.b32.xlu0 %v1084_v54, %s1879_s4  ;;  %v79_v54 = vld [vmem:[%s2281_s7 + $0x18] sm:$0xff] }
0x136d   :  { %1090 = vrot.lane.b32.xlu1 %v1058_v57, %s1878_s0  ;;  %v1334_v27 = vrot.slane %v1058_v57, 6  ;;  %v1674_v55 = vpack.c.bf16 %v79_v54, %v78_v53 }
0x136f   :  { %v1347_v51 = vsel %vm1341_vm7, %v2191_v19, %v1334_v27 }
0x13de   :  { %v1087_v58 = vpop.permute.xlu0 %1086 }
0x13df   :  { %v1091_v59 = vpop.permute.xlu1 %1090 }
0x13e0   :  { %v1093_v60 = vsel %vm159_vm2, %v1087_v58, %v1091_v59 }
0x13e1   :  { %1486 = vmatmul.mubr.msk.f32.vlgmr.msra.gmra.mrb[8].mxu0 %vm283_vm6, %v1093_v60 }
0x14b4   :  { %v1163_v62 = vpop.f32.mrb[8].mxu0 }
0x14b5   :  { %v1194_v63 = vadd.f32 %v1163_v62, %v1988_v17  ;;  %v1165_v0 = vpop.f32.mrb[9].mxu0 }
0x14b6   :  { %v1168_v2 = vadd.f32 %v2053_v61, %v1165_v0  ;;  %v1491_v0 = vld [vmem:[%s2282_s8] ss:$0 sm:$0xff] }
0x14b7   :  { %v1488_v3 = vmul.f32 -1.442695, %v1194_v63 }
0x14b8   :  { %v1487_v4 = vmul.f32 -1.442695, %v1168_v2 }
0x14b9   :  { %1791 = vpow2.f32 %v1488_v3 }
0x14ba   :  { %1793 = vpow2.f32 %v1487_v4 }
0x14bb   :  { %1795 = vtanh.f32 %v1194_v63 }
0x14bc   :  { %1797 = vtanh.f32 %v1168_v2 }
0x14c3   :  { %v1792_v33 = vpop.eup %1791 }
0x14c4   :  { %v1794_v5 = vpop.eup %1793  ;;  %v1199_v6 = vadd.f32 1.0, %v1792_v33 }
0x14c5   :  { %v1173_v7 = vadd.f32 1.0, %v1794_v5  ;;  %v1796_v8 = vpop.eup %1795 }
0x14c6   :  { %1799 = vrcp.f32 %v1199_v6  ;;  %v1798_v9 = vpop.eup %1797 }
0x14c7   :  { %1801 = vrcp.f32 %v1173_v7 }
0x14d0   :  { %v1800_v10 = vpop.eup %1799 }
0x14d1   :  { %v1802_v11 = vpop.eup %1801  ;;  %v1202_v17 = vsel %vm1992_vm5, %v1796_v8, %v1800_v10 }
0x14d2   :  { %1205 = vrot.lane.b32.xlu1 %v1202_v17, %s1878_s0  ;;  %v1176_v12 = vsel %vm1992_vm5, %v1798_v9, %v1802_v11  ;;  %v1203_v16 = vmul.f32 %v1202_v17, %v1078_v44 }
0x14d3   :  { %1179 = vrot.lane.b32.xlu0 %v1176_v12, %s1878_s0  ;;  %v1177_v20 = vmul.f32 %v1176_v12, %v1052_v48 }
0x1544   :  { %v1206_v13 = vpop.permute.xlu1 %1205 }
0x1545   :  { %v1208_v14 = vmul.f32 %v1206_v13, %v1202_v17  ;;  %v1180_v35 = vpop.permute.xlu0 %1179 }
0x1546   :  { %v1182_v15 = vmul.f32 %v1180_v35, %v1176_v12 }
0x1547   :  { %1210 = vrot.lane.b32.xlu1 %v1208_v14, %s1879_s4 }
0x1548   :  { %1184 = vrot.lane.b32.xlu0 %v1182_v15, %s1879_s4 }
0x15b9   :  { %v1211_v18 = vpop.permute.xlu1 %1210 }
0x15ba   :  { %v1213_v21 = vadd.f32 %v1211_v18, %v1203_v16  ;;  %v1185_v22 = vpop.permute.xlu0 %1184 }
0x15bb   :  { %v1187_v24 = vadd.f32 %v1185_v22, %v1177_v20 }
0x15bc   :  { %1803 = vtanh.f32 %v1213_v21 }
0x15bd   :  { %1805 = vtanh.f32 %v1187_v24 }
0x15c6   :  { %v1804_v25 = vpop.eup %1803 }
0x15c7   :  { %v1806_v26 = vpop.eup %1805  ;;  %1216 = vrot.lane.b32.xlu1 %v1804_v25, %s1878_s0 }
0x15c8   :  { %1190 = vrot.lane.b32.xlu0 %v1806_v26, %s1878_s0 }
0x1639   :  { %v1217_v39 = vpop.permute.xlu1 %1216 }
0x163a   :  { %v1219_v1 = vmul.f32 %v1217_v39, %v1202_v17  ;;  %v1191_v40 = vpop.permute.xlu0 %1190 }
0x163b   :  { %v1193_v45 = vmul.f32 %v1191_v40, %v1176_v12 }
0x163c   :  { %1221 = vrot.lane.b32.xlu0 %v1219_v1, %s1879_s4 }
0x163d   :  { %v1336_v46 = vrot.slane %v1193_v45, 4  ;;  %1225 = vrot.lane.b32.xlu1 %v1193_v45, %s1878_s0 }
0x163f   :  { %v1348_v52 = vsel %vm1343_vm8, %v1347_v51, %v1336_v46 }
0x16ae   :  { %v1222_v56 = vpop.permute.xlu0 %1221 }
0x16af   :  { %v1226_v28 = vpop.permute.xlu1 %1225 }
0x16b0   :  { %v1228_v29 = vsel %vm159_vm2, %v1222_v56, %v1226_v28 }
0x16b1   :  { %1489 = vmatmul.mubr.msk.f32.vlgmr.msra.gmra.mrb[8].mxu1 %vm283_vm6, %v1228_v29 }
0x1784   :  { %v1298_v30 = vpop.f32.mrb[8].mxu1 }
0x1785   :  { %v1299_v32 = vpop.f32.mrb[9].mxu1 }
0x1786   :  { %v1302_v31 = vadd.f32 %v2053_v61, %v1299_v32 }
0x1788   :  { %v1490_v34 = vmul.f32 -1.442695, %v1302_v31 }
0x178a   :  { %1807 = vpow2.f32 %v1490_v34 }
0x178b   :  { %1809 = vtanh.f32 %v1302_v31 }
0x1794   :  { %v1808_v36 = vpop.eup %1807 }
0x1795   :  { %v1307_v37 = vadd.f32 1.0, %v1808_v36  ;;  %v1810_v38 = vpop.eup %1809 }
0x1797   :  { %1811 = vrcp.f32 %v1307_v37 }
0x17a1   :  { %v1812_v19 = vpop.eup %1811 }
0x17a2   :  { %v1310_v41 = vsel %vm1992_vm5, %v1810_v38, %v1812_v19 }
0x17a3   :  { %1313 = vrot.lane.b32.xlu0 %v1310_v41, %s1878_s0  ;;  %v1311_v61 = vmul.f32 %v1310_v41, %v1187_v24 }
0x1815   :  { %v1314_v43 = vpop.permute.xlu0 %1313 }
0x1816   :  { %v1316_v44 = vmul.f32 %v1314_v43, %v1310_v41 }
0x1818   :  { %1318 = vrot.lane.b32.xlu1 %v1316_v44, %s1879_s4 }
0x181c   :  { %1359 = vrot.lane.b32.xlu1 %v2167_v42, %s1879_s4  ;;  %v1670_v42 = vpack.c.bf16 %v77_v50, %v76_v23 }
0x181e   :  { %1671 = vmatprep.subr.bf16.mxu0 %v1670_v42 }
0x181f   :  { %1673 = vmatpush3.bf16.msra.mxu0 %v1670_v42 }
0x1820   :  { %1675 = vmatprep.subr.bf16.mxu0 %v1674_v55 }
0x1823   :  { %1677 = vmatpush3.bf16.msra.mxu0 %v1674_v55 }
0x188a   :  { %v1319_v47 = vpop.permute.xlu1 %1318 }
0x188b   :  { %v1321_v48 = vadd.f32 %v1319_v47, %v1311_v61 }
0x188d   :  { %1813 = vtanh.f32 %v1321_v48 }
0x188e   :  { %v1360_v49 = vpop.permute.xlu1 %1359 }
0x188f   :  { %1533 = vmatprep.mubr.msk.f32.mxu0 %vm159_vm2, %v1360_v49 }
0x1897   :  { %v1814_v57 = vpop.eup %1813 }
0x1898   :  { %1324 = vrot.lane.b32.xlu0 %v1814_v57, %s1878_s0 }
0x190a   :  { %v1325_v58 = vpop.permute.xlu0 %1324 }
0x190b   :  { %v1327_v59 = vmul.f32 %v1325_v58, %v1310_v41 }
0x190d   :  { %v1339_v60 = vrot.slane %v1327_v59, 2 }
0x190f   :  { %v1349_v62 = vsel %vm1345_vm9, %v1348_v52, %v1339_v60 }
0x1910   :  { %1361 = vrot.lane.b32.xlu0 %v1349_v62, %s1879_s4 }
0x1982   :  { %v1362_v63 = vpop.permute.xlu0 %1361 }
0x1983   :  { %1534 = vmatmul.mubr.msk.f32.vlgmr.msra.gmra.mrb[10].mxu0 %vm159_vm2, %v1362_v63 }
0x1a56   :  { %v1535_v2 = vpop.f32.mrb[10].mxu0 }
0x1a57   :  { %v1439_v3 = vadd.f32 %v1535_v2, %v1491_v0  ;;  %v1433_v4 = vpop.f32.mrb[11].mxu0 }
0x1a58   :  { %v1434_v33 = vadd.f32 %v1491_v0, %v1433_v4 }
0x1a59   :  { %v1495_v5 = vmul.f32 -1.442695, %v1439_v3 }
0x1a5a   :  { %v1494_v6 = vmul.f32 -1.442695, %v1434_v33 }
0x1a5b   :  { %1815 = vpow2.f32 %v1495_v5 }
0x1a5c   :  { %1817 = vpow2.f32 %v1494_v6 }
0x1a65   :  { %v1816_v7 = vpop.eup %1815 }
0x1a66   :  { %v1818_v8 = vpop.eup %1817  ;;  %v1449_v9 = vadd.f32 1.0, %v1816_v7 }
0x1a67   :  { %v1448_v10 = vadd.f32 1.0, %v1818_v8 }
0x1a68   :  { %1819 = vrcp.f32 %v1449_v9 }
0x1a69   :  { %1821 = vrcp.f32 %v1448_v10 }
0x1a72   :  { %v1820_v11 = vpop.eup %1819 }
0x1a73   :  { %v1822_v17 = vpop.eup %1821  ;;  %1456 = vst.msk [vmem:[%s2283_s9 + $0x8] sm:$0xff] %vm1454_vm10, %v1820_v11 }
0x1a74   :  { %1455 = vst.msk [vmem:[%s2283_s9] sm:$0xff] %vm1454_vm10, %v1822_v17 }
0x1a75   :  { %1461 = vsyncpa [#allocation3], 1 }
0x1a76   :  { %1462 = vsyncpa [#allocation5], 1 }

</bundles_post_ra>
